<compile_context>
chip_gen: v7x
topology: tpu7x:2x2x1
jax: 0.10.0
libtpu: 0.0.40
codegen_flags: <defaults>
</compile_context>

<pallas_src>
import functools

import jax
import jax.numpy as jnp
from jax.experimental import pallas as pl
from jax.experimental.pallas import tpu as pltpu


# ---------------------------------------------------------------------------
# Fused Pallas kernel: 3x 1x1-conv (one matmul) + 3x3/s1 valid max-pool
# ---------------------------------------------------------------------------
def _fused_inception_kernel(x_ref, w_ref, b_ref,
                            o1_ref, o2_ref, o3_ref, op_ref,
                            hm_ref, *, H, W):
    """One grid step = one batch image.

    x_ref  : (C, H*W)      flattened NCHW image (lane axis = H*W, lane-dense)
    w_ref  : (80, C)       rows 0:64 = branch_1, row 64 = branch_2[0],
                           row 72 = conv_3, remaining rows zero padding
    b_ref  : (80, 1)       biases in the same row layout
    o1_ref : (64, H*W)     branch_1 output
    o2_ref : (1, H*W)      branch_2[0] output
    o3_ref : (1, H*W)      conv_3 output
    op_ref : (C, H-2, W-2) max-pool output
    hm_ref : (C, H*W)      VMEM scratch for the horizontal 3-max pass
    """
    HW = H * W
    Ho, Wo = H - 2, W - 2

    # ---- three 1x1 convs as ONE MXU matmul over packed weights -------------
    y = jnp.dot(w_ref[...], x_ref[...], preferred_element_type=jnp.float32)
    y = y + b_ref[...]
    o1_ref[...] = y[0:64, :].astype(o1_ref.dtype)     # sublane-aligned slices
    o2_ref[...] = y[64:65, :].astype(o2_ref.dtype)
    o3_ref[...] = y[72:73, :].astype(o3_ref.dtype)

    # ---- 3x3 / stride-1 / valid max-pool on the same resident x block ------
    # Horizontal pass (vectorized, full width): hm[c, p] = max(x[p..p+2]).
    hm_ref[:, 0:HW - 2] = jnp.maximum(
        jnp.maximum(x_ref[:, 0:HW - 2], x_ref[:, 1:HW - 1]),
        x_ref[:, 2:HW])

    # Vertical pass: rolling 3-row max over the per-row spans of hm.
    # span(j) = horizontal maxima of input row j over the valid output cols.
    def span(j):
        base = j * W
        return hm_ref[:, base:base + Wo]

    r0 = span(0)
    r1 = span(1)
    for i in range(Ho):            # Ho is static; loop unrolls at trace time
        r2 = span(i + 2)
        op_ref[:, i, :] = jnp.maximum(jnp.maximum(r0, r1), r2)
        r0, r1 = r1, r2


# ---------------------------------------------------------------------------
# Wrapper
# ---------------------------------------------------------------------------
def _vmem_limit_bytes():
    """Generation-aware scoped-VMEM limit (v5e/v6e: 128 MiB phys, v7x: 64)."""
    try:
        cap = int(pltpu.get_tpu_info().vmem_capacity_bytes)
    except Exception:
        cap = 64 << 20          # conservative fallback (v7x physical VMEM)
    return min((cap * 3) // 4, 96 << 20)


def inception_forward(x_nchw, w1, b1, w2, b2, w3, b3):
    """Fused branch_1 / branch_2[0] / conv_3 / pooling_1. NCHW in / NCHW out."""
    N, C, H, W = x_nchw.shape
    assert H >= 3 and W >= 3, "MaxPool2d(kernel_size=3, stride=1) needs H,W >= 3"
    HW = H * W
    Ho, Wo = H - 2, W - 2

    # Pack the three 1x1-conv weights into one (80, C) matrix; rows 64 and 72
    # (the Cout=1 branches) are sublane-aligned for cheap extraction.
    zw = jnp.zeros((7, C), jnp.float32)
    zb = jnp.zeros((7,), jnp.float32)
    w_cat = jnp.concatenate([w1, w2, zw, w3, zw], axis=0)          # (80, C)
    b_cat = jnp.concatenate([b1, b2, zb, b3, zb], axis=0).reshape(80, 1)

    x_flat = x_nchw.reshape(N, C, HW)   # free view of NCHW (no transpose)

    kernel = functools.partial(_fused_inception_kernel, H=H, W=W)

    o1, o2, o3, op = pl.pallas_call(
        kernel,
        out_shape=(
            jax.ShapeDtypeStruct((N, 64, HW), jnp.float32),
            jax.ShapeDtypeStruct((N, 1, HW), jnp.float32),
            jax.ShapeDtypeStruct((N, 1, HW), jnp.float32),
            jax.ShapeDtypeStruct((N, C, Ho, Wo), jnp.float32),
        ),
        grid=(N,),
        in_specs=[
            pl.BlockSpec((None, C, HW), lambda n: (n, 0, 0)),
            pl.BlockSpec((80, C), lambda n: (0, 0)),
            pl.BlockSpec((80, 1), lambda n: (0, 0)),
        ],
        out_specs=(
            pl.BlockSpec((None, 64, HW), lambda n: (n, 0, 0)),
            pl.BlockSpec((None, 1, HW), lambda n: (n, 0, 0)),
            pl.BlockSpec((None, 1, HW), lambda n: (n, 0, 0)),
            pl.BlockSpec((None, C, Ho, Wo), lambda n: (n, 0, 0, 0)),
        ),
        scratch_shapes=[pltpu.VMEM((C, HW), jnp.float32)],
        compiler_params=pltpu.CompilerParams(
            dimension_semantics=("parallel",),
            vmem_limit_bytes=_vmem_limit_bytes(),
        ),
    )(x_flat, w_cat, b_cat)

    # Free reshapes back to NCHW (data already channel-major).
    return (o1.reshape(N, 64, H, W),
            o2.reshape(N, 1, H, W),
            o3.reshape(N, 1, H, W),
            op)


# ---------------------------------------------------------------------------
# Module: deterministic parameter init + "forward"
# ---------------------------------------------------------------------------
class InceptionPallas:
    def __init__(self, in_channels: int, key):
        k1, k2, k3, k4, k5, k6 = jax.random.split(key, 6)

        def conv_init(kw, kb, cout, cin):
            # PyTorch Conv2d default init: U(-s, s), s = 1/sqrt(cin*kh*kw)
            s = 1.0 / jnp.sqrt(jnp.float32(cin * 1 * 1))
            w = jax.random.uniform(kw, (cout, cin), jnp.float32, -s, s)
            b = jax.random.uniform(kb, (cout,), jnp.float32, -s, s)
            return w, b

        self.branch1_w, self.branch1_b = conv_init(k1, k2, 64, in_channels)
        self.branch2a_w, self.branch2a_b = conv_init(k3, k4, 1, in_channels)
        self.conv3_w, self.conv3_b = conv_init(k5, k6, 1, in_channels)
        # TODO(synk): branch_2[1] = nn.Conv2d(3, 123) lacks kernel_size; invalid
        # in PyTorch, so no parameters are created for it here.

    def forward(self, x_nchw):
        # TODO(synk): reference forward() is `pass`; we return the outputs of
        # the well-defined sub-modules instead of None.
        return inception_forward(
            x_nchw,
            self.branch1_w, self.branch1_b,
            self.branch2a_w, self.branch2a_b,
            self.conv3_w, self.conv3_b,
        )


if __name__ == "__main__":
    key = jax.random.PRNGKey(0)
    kx, kp = jax.random.split(key)

    N, C, H, W = 2, 4, 16, 16
    x = jax.random.normal(kx, (N, C, H, W), jnp.float32)

    module = InceptionPallas(in_channels=C, key=kp)
    outs = module.forward(x)
    outs = jax.block_until_ready(outs)

    # Correctness checks against plain JAX references (all four outputs).
    def ref_conv1x1(xx, w, b):
        return jnp.einsum("nchw,oc->nohw", xx, w) + b[None, :, None, None]

    ref_b1 = ref_conv1x1(x, module.branch1_w, module.branch1_b)
    ref_b2a = ref_conv1x1(x, module.branch2a_w, module.branch2a_b)
    ref_c3 = ref_conv1x1(x, module.conv3_w, module.conv3_b)
    ref_p1 = jax.lax.reduce_window(
        x, -jnp.inf, jax.lax.max,
        window_dimensions=(1, 1, 3, 3), window_strides=(1, 1, 1, 1),
        padding="VALID",
    )

    assert outs[0].shape == (N, 64, H, W)
    assert outs[1].shape == (N, 1, H, W)
    assert outs[2].shape == (N, 1, H, W)
    assert outs[3].shape == (N, C, H - 2, W - 2)
    assert jnp.allclose(outs[0], ref_b1, atol=1e-5)
    assert jnp.allclose(outs[1], ref_b2a, atol=1e-5)
    assert jnp.allclose(outs[2], ref_c3, atol=1e-5)
    assert jnp.allclose(outs[3], ref_p1, atol=1e-6)

    print("KERNEL_OK")
</pallas_src>

<mosaic_0001>
module attributes {stable_mosaic.version = 11 : i64} {
  func.func @_fused_inception_kernel(%arg0: i32, %arg1: memref<1x4x256xf32, #tpu.memory_space<vmem>>, %arg2: memref<80x4xf32, #tpu.memory_space<vmem>>, %arg3: memref<80x1xf32, #tpu.memory_space<vmem>>, %arg4: memref<1x64x256xf32, #tpu.memory_space<vmem>>, %arg5: memref<1x1x256xf32, #tpu.memory_space<vmem>>, %arg6: memref<1x1x256xf32, #tpu.memory_space<vmem>>, %arg7: memref<1x4x14x14xf32, #tpu.memory_space<vmem>>, %arg8: memref<4x256xf32, #tpu.memory_space<vmem>>) attributes {dimension_semantics = [#tpu.dimension_semantics<parallel>], iteration_bounds = array<i64: 2>, scalar_prefetch = 0 : i64, scratch_operands = 1 : i64, tpu.core_type = #tpu.core_type<tc>, window_params = [{transform_indices = @transform_0, window_bounds = array<i64: 1, 4, 256>}, {pipeline_mode = #tpu.pipeline_mode<synchronous>, transform_indices = @transform_1, window_bounds = array<i64: 80, 4>}, {pipeline_mode = #tpu.pipeline_mode<synchronous>, transform_indices = @transform_2, window_bounds = array<i64: 80, 1>}, {transform_indices = @transform_3, window_bounds = array<i64: 1, 64, 256>}, {transform_indices = @transform_4, window_bounds = array<i64: 1, 1, 256>}, {transform_indices = @transform_5, window_bounds = array<i64: 1, 1, 256>}, {transform_indices = @transform_6, window_bounds = array<i64: 1, 4, 14, 14>}]} {
    %c0 = arith.constant 0 : index
    %c0_0 = arith.constant 0 : index
    %0 = vector.load %arg2[%c0, %c0_0] : memref<80x4xf32, #tpu.memory_space<vmem>>, vector<80x4xf32>
    %c0_1 = arith.constant 0 : index
    %c0_2 = arith.constant 0 : index
    %c0_3 = arith.constant 0 : index
    %1 = vector.load %arg1[%c0_1, %c0_2, %c0_3] : memref<1x4x256xf32, #tpu.memory_space<vmem>>, vector<1x4x256xf32>
    %2 = vector.shape_cast %1 : vector<1x4x256xf32> to vector<4x256xf32>
    %cst = arith.constant dense<0.000000e+00> : vector<80x256xf32>
    %3 = tpu.matmul %0, %2, %cst {dimension_numbers = #tpu.dot_dimension_numbers<[1], [0], [0], [1], [0, 0, 1, 1], [], []>} : vector<80x4xf32>, vector<4x256xf32>, vector<80x256xf32> -> vector<80x256xf32>
    %c0_4 = arith.constant 0 : index
    %c0_5 = arith.constant 0 : index
    %4 = vector.load %arg3[%c0_4, %c0_5] : memref<80x1xf32, #tpu.memory_space<vmem>>, vector<80x1xf32>
    %5 = vector.broadcast %4 : vector<80x1xf32> to vector<80x256xf32>
    %6 = arith.addf %3, %5 : vector<80x256xf32>
    %7 = vector.extract_strided_slice %6 {offsets = [0, 0], sizes = [64, 256], strides = [1, 1]} : vector<80x256xf32> to vector<64x256xf32>
    %c0_6 = arith.constant 0 : index
    %c0_7 = arith.constant 0 : index
    %c0_8 = arith.constant 0 : index
    %8 = vector.load %arg4[%c0_6, %c0_7, %c0_8] : memref<1x64x256xf32, #tpu.memory_space<vmem>>, vector<1x64x256xf32>
    %9 = vector.shape_cast %8 : vector<1x64x256xf32> to vector<64x256xf32>
    %10 = vector.shape_cast %7 : vector<64x256xf32> to vector<1x64x256xf32>
    tpu.vector_store %arg4[%c0_6, %c0_7, %c0_8], %10 {strides = array<i32>} : memref<1x64x256xf32, #tpu.memory_space<vmem>>, vector<1x64x256xf32>,
    %11 = vector.extract_strided_slice %6 {offsets = [64, 0], sizes = [1, 256], strides = [1, 1]} : vector<80x256xf32> to vector<1x256xf32>
    %c0_9 = arith.constant 0 : index
    %c0_10 = arith.constant 0 : index
    %c0_11 = arith.constant 0 : index
    %12 = vector.load %arg5[%c0_9, %c0_10, %c0_11] : memref<1x1x256xf32, #tpu.memory_space<vmem>>, vector<1x1x256xf32>
    %13 = vector.shape_cast %12 : vector<1x1x256xf32> to vector<1x256xf32>
    %14 = vector.shape_cast %11 : vector<1x256xf32> to vector<1x1x256xf32>
    tpu.vector_store %arg5[%c0_9, %c0_10, %c0_11], %14 {strides = array<i32>} : memref<1x1x256xf32, #tpu.memory_space<vmem>>, vector<1x1x256xf32>,
    %15 = vector.extract_strided_slice %6 {offsets = [72, 0], sizes = [1, 256], strides = [1, 1]} : vector<80x256xf32> to vector<1x256xf32>
    %c0_12 = arith.constant 0 : index
    %c0_13 = arith.constant 0 : index
    %c0_14 = arith.constant 0 : index
    %16 = vector.load %arg6[%c0_12, %c0_13, %c0_14] : memref<1x1x256xf32, #tpu.memory_space<vmem>>, vector<1x1x256xf32>
    %17 = vector.shape_cast %16 : vector<1x1x256xf32> to vector<1x256xf32>
    %18 = vector.shape_cast %15 : vector<1x256xf32> to vector<1x1x256xf32>
    tpu.vector_store %arg6[%c0_12, %c0_13, %c0_14], %18 {strides = array<i32>} : memref<1x1x256xf32, #tpu.memory_space<vmem>>, vector<1x1x256xf32>,
    %c0_15 = arith.constant 0 : index
    %c0_16 = arith.constant 0 : index
    %c0_17 = arith.constant 0 : index
    %19 = vector.load %arg1[%c0_15, %c0_16, %c0_17] : memref<1x4x256xf32, #tpu.memory_space<vmem>>, vector<1x4x254xf32>
    %20 = vector.shape_cast %19 : vector<1x4x254xf32> to vector<4x254xf32>
    %c0_18 = arith.constant 0 : index
    %c0_19 = arith.constant 0 : index
    %c1 = arith.constant 1 : index
    %21 = vector.load %arg1[%c0_18, %c0_19, %c1] : memref<1x4x256xf32, #tpu.memory_space<vmem>>, vector<1x4x254xf32>
    %22 = vector.shape_cast %21 : vector<1x4x254xf32> to vector<4x254xf32>
    %23 = arith.maximumf %20, %22 : vector<4x254xf32>
    %c0_20 = arith.constant 0 : index
    %c0_21 = arith.constant 0 : index
    %c2 = arith.constant 2 : index
    %24 = vector.load %arg1[%c0_20, %c0_21, %c2] : memref<1x4x256xf32, #tpu.memory_space<vmem>>, vector<1x4x254xf32>
    %25 = vector.shape_cast %24 : vector<1x4x254xf32> to vector<4x254xf32>
    %26 = arith.maximumf %23, %25 : vector<4x254xf32>
    %c0_22 = arith.constant 0 : index
    %c0_23 = arith.constant 0 : index
    %27 = vector.load %arg8[%c0_22, %c0_23] : memref<4x256xf32, #tpu.memory_space<vmem>>, vector<4x254xf32>
    tpu.vector_store %arg8[%c0_22, %c0_23], %26 {strides = array<i32>} : memref<4x256xf32, #tpu.memory_space<vmem>>, vector<4x254xf32>,
    %c0_24 = arith.constant 0 : index
    %c0_25 = arith.constant 0 : index
    %28 = vector.load %arg8[%c0_24, %c0_25] : memref<4x256xf32, #tpu.memory_space<vmem>>, vector<4x14xf32>
    %c0_26 = arith.constant 0 : index
    %c16 = arith.constant 16 : index
    %29 = vector.load %arg8[%c0_26, %c16] : memref<4x256xf32, #tpu.memory_space<vmem>>, vector<4x14xf32>
    %c0_27 = arith.constant 0 : index
    %c32 = arith.constant 32 : index
    %30 = vector.load %arg8[%c0_27, %c32] : memref<4x256xf32, #tpu.memory_space<vmem>>, vector<4x14xf32>
    %31 = arith.maximumf %28, %29 : vector<4x14xf32>
    %32 = arith.maximumf %31, %30 : vector<4x14xf32>
    %c0_28 = arith.constant 0 : index
    %c0_29 = arith.constant 0 : index
    %c0_30 = arith.constant 0 : index
    %c0_31 = arith.constant 0 : index
    %33 = vector.load %arg7[%c0_28, %c0_29, %c0_30, %c0_31] : memref<1x4x14x14xf32, #tpu.memory_space<vmem>>, vector<1x4x1x14xf32>
    %34 = vector.shape_cast %33 : vector<1x4x1x14xf32> to vector<4x14xf32>
    %35 = vector.shape_cast %32 : vector<4x14xf32> to vector<1x4x1x14xf32>
    tpu.vector_store %arg7[%c0_28, %c0_29, %c0_30, %c0_31], %35 {strides = array<i32>} : memref<1x4x14x14xf32, #tpu.memory_space<vmem>>, vector<1x4x1x14xf32>,
    %c0_32 = arith.constant 0 : index
    %c48 = arith.constant 48 : index
    %36 = vector.load %arg8[%c0_32, %c48] : memref<4x256xf32, #tpu.memory_space<vmem>>, vector<4x14xf32>
    %37 = arith.maximumf %29, %30 : vector<4x14xf32>
    %38 = arith.maximumf %37, %36 : vector<4x14xf32>
    %c0_33 = arith.constant 0 : index
    %c0_34 = arith.constant 0 : index
    %c1_35 = arith.constant 1 : index
    %c0_36 = arith.constant 0 : index
    %39 = vector.load %arg7[%c0_33, %c0_34, %c1_35, %c0_36] : memref<1x4x14x14xf32, #tpu.memory_space<vmem>>, vector<1x4x1x14xf32>
    %40 = vector.shape_cast %39 : vector<1x4x1x14xf32> to vector<4x14xf32>
    %41 = vector.shape_cast %38 : vector<4x14xf32> to vector<1x4x1x14xf32>
    tpu.vector_store %arg7[%c0_33, %c0_34, %c1_35, %c0_36], %41 {strides = array<i32>} : memref<1x4x14x14xf32, #tpu.memory_space<vmem>>, vector<1x4x1x14xf32>,
    %c0_37 = arith.constant 0 : index
    %c64 = arith.constant 64 : index
    %42 = vector.load %arg8[%c0_37, %c64] : memref<4x256xf32, #tpu.memory_space<vmem>>, vector<4x14xf32>
    %43 = arith.maximumf %30, %36 : vector<4x14xf32>
    %44 = arith.maximumf %43, %42 : vector<4x14xf32>
    %c0_38 = arith.constant 0 : index
    %c0_39 = arith.constant 0 : index
    %c2_40 = arith.constant 2 : index
    %c0_41 = arith.constant 0 : index
    %45 = vector.load %arg7[%c0_38, %c0_39, %c2_40, %c0_41] : memref<1x4x14x14xf32, #tpu.memory_space<vmem>>, vector<1x4x1x14xf32>
    %46 = vector.shape_cast %45 : vector<1x4x1x14xf32> to vector<4x14xf32>
    %47 = vector.shape_cast %44 : vector<4x14xf32> to vector<1x4x1x14xf32>
    tpu.vector_store %arg7[%c0_38, %c0_39, %c2_40, %c0_41], %47 {strides = array<i32>} : memref<1x4x14x14xf32, #tpu.memory_space<vmem>>, vector<1x4x1x14xf32>,
    %c0_42 = arith.constant 0 : index
    %c80 = arith.constant 80 : index
    %48 = vector.load %arg8[%c0_42, %c80] : memref<4x256xf32, #tpu.memory_space<vmem>>, vector<4x14xf32>
    %49 = arith.maximumf %36, %42 : vector<4x14xf32>
    %50 = arith.maximumf %49, %48 : vector<4x14xf32>
    %c0_43 = arith.constant 0 : index
    %c0_44 = arith.constant 0 : index
    %c3 = arith.constant 3 : index
    %c0_45 = arith.constant 0 : index
    %51 = vector.load %arg7[%c0_43, %c0_44, %c3, %c0_45] : memref<1x4x14x14xf32, #tpu.memory_space<vmem>>, vector<1x4x1x14xf32>
    %52 = vector.shape_cast %51 : vector<1x4x1x14xf32> to vector<4x14xf32>
    %53 = vector.shape_cast %50 : vector<4x14xf32> to vector<1x4x1x14xf32>
    tpu.vector_store %arg7[%c0_43, %c0_44, %c3, %c0_45], %53 {strides = array<i32>} : memref<1x4x14x14xf32, #tpu.memory_space<vmem>>, vector<1x4x1x14xf32>,
    %c0_46 = arith.constant 0 : index
    %c96 = arith.constant 96 : index
    %54 = vector.load %arg8[%c0_46, %c96] : memref<4x256xf32, #tpu.memory_space<vmem>>, vector<4x14xf32>
    %55 = arith.maximumf %42, %48 : vector<4x14xf32>
    %56 = arith.maximumf %55, %54 : vector<4x14xf32>
    %c0_47 = arith.constant 0 : index
    %c0_48 = arith.constant 0 : index
    %c4 = arith.constant 4 : index
    %c0_49 = arith.constant 0 : index
    %57 = vector.load %arg7[%c0_47, %c0_48, %c4, %c0_49] : memref<1x4x14x14xf32, #tpu.memory_space<vmem>>, vector<1x4x1x14xf32>
    %58 = vector.shape_cast %57 : vector<1x4x1x14xf32> to vector<4x14xf32>
    %59 = vector.shape_cast %56 : vector<4x14xf32> to vector<1x4x1x14xf32>
    tpu.vector_store %arg7[%c0_47, %c0_48, %c4, %c0_49], %59 {strides = array<i32>} : memref<1x4x14x14xf32, #tpu.memory_space<vmem>>, vector<1x4x1x14xf32>,
    %c0_50 = arith.constant 0 : index
    %c112 = arith.constant 112 : index
    %60 = vector.load %arg8[%c0_50, %c112] : memref<4x256xf32, #tpu.memory_space<vmem>>, vector<4x14xf32>
    %61 = arith.maximumf %48, %54 : vector<4x14xf32>
    %62 = arith.maximumf %61, %60 : vector<4x14xf32>
    %c0_51 = arith.constant 0 : index
    %c0_52 = arith.constant 0 : index
    %c5 = arith.constant 5 : index
    %c0_53 = arith.constant 0 : index
    %63 = vector.load %arg7[%c0_51, %c0_52, %c5, %c0_53] : memref<1x4x14x14xf32, #tpu.memory_space<vmem>>, vector<1x4x1x14xf32>
    %64 = vector.shape_cast %63 : vector<1x4x1x14xf32> to vector<4x14xf32>
    %65 = vector.shape_cast %62 : vector<4x14xf32> to vector<1x4x1x14xf32>
    tpu.vector_store %arg7[%c0_51, %c0_52, %c5, %c0_53], %65 {strides = array<i32>} : memref<1x4x14x14xf32, #tpu.memory_space<vmem>>, vector<1x4x1x14xf32>,
    %c0_54 = arith.constant 0 : index
    %c128 = arith.constant 128 : index
    %66 = vector.load %arg8[%c0_54, %c128] : memref<4x256xf32, #tpu.memory_space<vmem>>, vector<4x14xf32>
    %67 = arith.maximumf %54, %60 : vector<4x14xf32>
    %68 = arith.maximumf %67, %66 : vector<4x14xf32>
    %c0_55 = arith.constant 0 : index
    %c0_56 = arith.constant 0 : index
    %c6 = arith.constant 6 : index
    %c0_57 = arith.constant 0 : index
    %69 = vector.load %arg7[%c0_55, %c0_56, %c6, %c0_57] : memref<1x4x14x14xf32, #tpu.memory_space<vmem>>, vector<1x4x1x14xf32>
    %70 = vector.shape_cast %69 : vector<1x4x1x14xf32> to vector<4x14xf32>
    %71 = vector.shape_cast %68 : vector<4x14xf32> to vector<1x4x1x14xf32>
    tpu.vector_store %arg7[%c0_55, %c0_56, %c6, %c0_57], %71 {strides = array<i32>} : memref<1x4x14x14xf32, #tpu.memory_space<vmem>>, vector<1x4x1x14xf32>,
    %c0_58 = arith.constant 0 : index
    %c144 = arith.constant 144 : index
    %72 = vector.load %arg8[%c0_58, %c144] : memref<4x256xf32, #tpu.memory_space<vmem>>, vector<4x14xf32>
    %73 = arith.maximumf %60, %66 : vector<4x14xf32>
    %74 = arith.maximumf %73, %72 : vector<4x14xf32>
    %c0_59 = arith.constant 0 : index
    %c0_60 = arith.constant 0 : index
    %c7 = arith.constant 7 : index
    %c0_61 = arith.constant 0 : index
    %75 = vector.load %arg7[%c0_59, %c0_60, %c7, %c0_61] : memref<1x4x14x14xf32, #tpu.memory_space<vmem>>, vector<1x4x1x14xf32>
    %76 = vector.shape_cast %75 : vector<1x4x1x14xf32> to vector<4x14xf32>
    %77 = vector.shape_cast %74 : vector<4x14xf32> to vector<1x4x1x14xf32>
    tpu.vector_store %arg7[%c0_59, %c0_60, %c7, %c0_61], %77 {strides = array<i32>} : memref<1x4x14x14xf32, #tpu.memory_space<vmem>>, vector<1x4x1x14xf32>,
    %c0_62 = arith.constant 0 : index
    %c160 = arith.constant 160 : index
    %78 = vector.load %arg8[%c0_62, %c160] : memref<4x256xf32, #tpu.memory_space<vmem>>, vector<4x14xf32>
    %79 = arith.maximumf %66, %72 : vector<4x14xf32>
    %80 = arith.maximumf %79, %78 : vector<4x14xf32>
    %c0_63 = arith.constant 0 : index
    %c0_64 = arith.constant 0 : index
    %c8 = arith.constant 8 : index
    %c0_65 = arith.constant 0 : index
    %81 = vector.load %arg7[%c0_63, %c0_64, %c8, %c0_65] : memref<1x4x14x14xf32, #tpu.memory_space<vmem>>, vector<1x4x1x14xf32>
    %82 = vector.shape_cast %81 : vector<1x4x1x14xf32> to vector<4x14xf32>
    %83 = vector.shape_cast %80 : vector<4x14xf32> to vector<1x4x1x14xf32>
    tpu.vector_store %arg7[%c0_63, %c0_64, %c8, %c0_65], %83 {strides = array<i32>} : memref<1x4x14x14xf32, #tpu.memory_space<vmem>>, vector<1x4x1x14xf32>,
    %c0_66 = arith.constant 0 : index
    %c176 = arith.constant 176 : index
    %84 = vector.load %arg8[%c0_66, %c176] : memref<4x256xf32, #tpu.memory_space<vmem>>, vector<4x14xf32>
    %85 = arith.maximumf %72, %78 : vector<4x14xf32>
    %86 = arith.maximumf %85, %84 : vector<4x14xf32>
    %c0_67 = arith.constant 0 : index
    %c0_68 = arith.constant 0 : index
    %c9 = arith.constant 9 : index
    %c0_69 = arith.constant 0 : index
    %87 = vector.load %arg7[%c0_67, %c0_68, %c9, %c0_69] : memref<1x4x14x14xf32, #tpu.memory_space<vmem>>, vector<1x4x1x14xf32>
    %88 = vector.shape_cast %87 : vector<1x4x1x14xf32> to vector<4x14xf32>
    %89 = vector.shape_cast %86 : vector<4x14xf32> to vector<1x4x1x14xf32>
    tpu.vector_store %arg7[%c0_67, %c0_68, %c9, %c0_69], %89 {strides = array<i32>} : memref<1x4x14x14xf32, #tpu.memory_space<vmem>>, vector<1x4x1x14xf32>,
    %c0_70 = arith.constant 0 : index
    %c192 = arith.constant 192 : index
    %90 = vector.load %arg8[%c0_70, %c192] : memref<4x256xf32, #tpu.memory_space<vmem>>, vector<4x14xf32>
    %91 = arith.maximumf %78, %84 : vector<4x14xf32>
    %92 = arith.maximumf %91, %90 : vector<4x14xf32>
    %c0_71 = arith.constant 0 : index
    %c0_72 = arith.constant 0 : index
    %c10 = arith.constant 10 : index
    %c0_73 = arith.constant 0 : index
    %93 = vector.load %arg7[%c0_71, %c0_72, %c10, %c0_73] : memref<1x4x14x14xf32, #tpu.memory_space<vmem>>, vector<1x4x1x14xf32>
    %94 = vector.shape_cast %93 : vector<1x4x1x14xf32> to vector<4x14xf32>
    %95 = vector.shape_cast %92 : vector<4x14xf32> to vector<1x4x1x14xf32>
    tpu.vector_store %arg7[%c0_71, %c0_72, %c10, %c0_73], %95 {strides = array<i32>} : memref<1x4x14x14xf32, #tpu.memory_space<vmem>>, vector<1x4x1x14xf32>,
    %c0_74 = arith.constant 0 : index
    %c208 = arith.constant 208 : index
    %96 = vector.load %arg8[%c0_74, %c208] : memref<4x256xf32, #tpu.memory_space<vmem>>, vector<4x14xf32>
    %97 = arith.maximumf %84, %90 : vector<4x14xf32>
    %98 = arith.maximumf %97, %96 : vector<4x14xf32>
    %c0_75 = arith.constant 0 : index
    %c0_76 = arith.constant 0 : index
    %c11 = arith.constant 11 : index
    %c0_77 = arith.constant 0 : index
    %99 = vector.load %arg7[%c0_75, %c0_76, %c11, %c0_77] : memref<1x4x14x14xf32, #tpu.memory_space<vmem>>, vector<1x4x1x14xf32>
    %100 = vector.shape_cast %99 : vector<1x4x1x14xf32> to vector<4x14xf32>
    %101 = vector.shape_cast %98 : vector<4x14xf32> to vector<1x4x1x14xf32>
    tpu.vector_store %arg7[%c0_75, %c0_76, %c11, %c0_77], %101 {strides = array<i32>} : memref<1x4x14x14xf32, #tpu.memory_space<vmem>>, vector<1x4x1x14xf32>,
    %c0_78 = arith.constant 0 : index
    %c224 = arith.constant 224 : index
    %102 = vector.load %arg8[%c0_78, %c224] : memref<4x256xf32, #tpu.memory_space<vmem>>, vector<4x14xf32>
    %103 = arith.maximumf %90, %96 : vector<4x14xf32>
    %104 = arith.maximumf %103, %102 : vector<4x14xf32>
    %c0_79 = arith.constant 0 : index
    %c0_80 = arith.constant 0 : index
    %c12 = arith.constant 12 : index
    %c0_81 = arith.constant 0 : index
    %105 = vector.load %arg7[%c0_79, %c0_80, %c12, %c0_81] : memref<1x4x14x14xf32, #tpu.memory_space<vmem>>, vector<1x4x1x14xf32>
    %106 = vector.shape_cast %105 : vector<1x4x1x14xf32> to vector<4x14xf32>
    %107 = vector.shape_cast %104 : vector<4x14xf32> to vector<1x4x1x14xf32>
    tpu.vector_store %arg7[%c0_79, %c0_80, %c12, %c0_81], %107 {strides = array<i32>} : memref<1x4x14x14xf32, #tpu.memory_space<vmem>>, vector<1x4x1x14xf32>,
    %c0_82 = arith.constant 0 : index
    %c240 = arith.constant 240 : index
    %108 = vector.load %arg8[%c0_82, %c240] : memref<4x256xf32, #tpu.memory_space<vmem>>, vector<4x14xf32>
    %109 = arith.maximumf %96, %102 : vector<4x14xf32>
    %110 = arith.maximumf %109, %108 : vector<4x14xf32>
    %c0_83 = arith.constant 0 : index
    %c0_84 = arith.constant 0 : index
    %c13 = arith.constant 13 : index
    %c0_85 = arith.constant 0 : index
    %111 = vector.load %arg7[%c0_83, %c0_84, %c13, %c0_85] : memref<1x4x14x14xf32, #tpu.memory_space<vmem>>, vector<1x4x1x14xf32>
    %112 = vector.shape_cast %111 : vector<1x4x1x14xf32> to vector<4x14xf32>
    %113 = vector.shape_cast %110 : vector<4x14xf32> to vector<1x4x1x14xf32>
    tpu.vector_store %arg7[%c0_83, %c0_84, %c13, %c0_85], %113 {strides = array<i32>} : memref<1x4x14x14xf32, #tpu.memory_space<vmem>>, vector<1x4x1x14xf32>,
    return
  }
  func.func @transform_0(%arg0: i32) -> (i32, i32, i32) {
    %c0_i32 = arith.constant 0 : i32
    %c0_i32_0 = arith.constant 0 : i32
    %c0_i32_1 = arith.constant 0 : i32
    return %arg0, %c0_i32, %c0_i32_0 : i32, i32, i32
  }
  func.func @transform_1(%arg0: i32) -> (i32, i32) {
    %c0_i32 = arith.constant 0 : i32
    %c0_i32_0 = arith.constant 0 : i32
    %c0_i32_1 = arith.constant 0 : i32
    return %c0_i32, %c0_i32_0 : i32, i32
  }
  func.func @transform_2(%arg0: i32) -> (i32, i32) {
    %c0_i32 = arith.constant 0 : i32
    %c0_i32_0 = arith.constant 0 : i32
    %c0_i32_1 = arith.constant 0 : i32
    return %c0_i32, %c0_i32_0 : i32, i32
  }
  func.func @transform_3(%arg0: i32) -> (i32, i32, i32) {
    %c0_i32 = arith.constant 0 : i32
    %c0_i32_0 = arith.constant 0 : i32
    %c0_i32_1 = arith.constant 0 : i32
    return %arg0, %c0_i32, %c0_i32_0 : i32, i32, i32
  }
  func.func @transform_4(%arg0: i32) -> (i32, i32, i32) {
    %c0_i32 = arith.constant 0 : i32
    %c0_i32_0 = arith.constant 0 : i32
    %c0_i32_1 = arith.constant 0 : i32
    return %arg0, %c0_i32, %c0_i32_0 : i32, i32, i32
  }
  func.func @transform_5(%arg0: i32) -> (i32, i32, i32) {
    %c0_i32 = arith.constant 0 : i32
    %c0_i32_0 = arith.constant 0 : i32
    %c0_i32_1 = arith.constant 0 : i32
    return %arg0, %c0_i32, %c0_i32_0 : i32, i32, i32
  }
  func.func @transform_6(%arg0: i32) -> (i32, i32, i32, i32) {
    %c0_i32 = arith.constant 0 : i32
    %c0_i32_0 = arith.constant 0 : i32
    %c0_i32_1 = arith.constant 0 : i32
    %c0_i32_2 = arith.constant 0 : i32
    return %arg0, %c0_i32, %c0_i32_0, %c0_i32_1 : i32, i32, i32, i32
  }
}

</mosaic_0001>

<bundles_post_ra>
// kernel: tpu_custom_call.1
= control target key start
LH: loop header
LB: loop body
LE: loop exit
PB: predicated region body
PF: predicated region fallthrough
CT: control target
= control target key end

     0   :  { %s2737_s0 = inlined_call_operand.vmem [shape: f32[2,4,256], index: 0, kind: input, shape index: {}]   ;;  %s2738_s1 = inlined_call_operand.vmem [shape: f32[80,4], index: 1, kind: input, shape index: {}]   ;;  %s2739_s2 = inlined_call_operand.vmem [shape: f32[80,1], index: 2, kind: input, shape index: {}]   ;;  %s2740_s3 = inlined_call_operand.hbm [shape: f32[2,64,256], index: 3, kind: output, shape index: {0}]   ;;  %s2741_s4 = inlined_call_operand.hbm [shape: f32[2,1,256], index: 4, kind: output, shape index: {1}]   ;;  %s2742_s5 = inlined_call_operand.hbm [shape: f32[2,1,256], index: 5, kind: output, shape index: {2}]   ;;  %s2743_s6 = inlined_call_operand.vmem [shape: f32[2,4,14,14], index: 6, kind: output, shape index: {3}]  }
   0x1   :  { %2751 = sst [smem:[#allocation10_spill]] %s2737_s0 }
   0x2   :  { %12 = vsyncpa [#allocation4], 0 }
   0x3   :  { %14 = vsyncpa [#allocation4 + $0x1], 0 }
   0x4   :  { %15 = vsyncpa [#allocation6], 0 }
   0x5   :  { %17 = vsyncpa [#allocation6 + $0x1], 0  ;;  %s1967_s21 = smov 0   ;;  %s1969_s22 = smov 0  }
   0x6   :  { %s1971_s23 = smov 0   ;;  %s1973_s24 = smov 0  }
   0x7 LB: > { %s1988_s25 = sadd.s32 4294967295, %s1914_s24   ;;  %s2744_s26 = sadd.s32 4294967294, %s1914_s24   ;;  %s1914_s24 = sphi %s1973_s24, %s2764_s24   ;;  %s1910_s23 = sphi %s1971_s23, %s2763_s23   ;;  %s1906_s22 = sphi %s1969_s22, %s2762_s22   ;;  %s1902_s21 = sphi %s1967_s21, %s2761_s21  }
   0x8   : > { %s1992_s27 = sadd.s32 1, %s1914_s24   ;;  %s98_s28 = sadd.s32 1, %s1910_s23 }
   0x9   : > { %s95_s29 = ssub.s32 %s1914_s24, %s1992_s27  ;;  %p108_p0 = scmp.ne.s32.totalorder %s1910_s23, %s1906_s22 }
   0xa   : > { %p96_p1 = scmp.eq.s32.totalorder %s95_s29, 0  ;;  %p109_p2 = scmp.eq.s32.totalorder %s1988_s25, 1 }
   0xb   : > { %p114_p3 = scmp.ne.s32.totalorder %s1906_s22, %s1902_s21  ;;  %p115_p4 = scmp.eq.s32.totalorder %s2744_s26, 1 }
   0xc   : > { %s2005_s30 = scalar_select %p96_p1, %s1910_s23, %s98_s28  }
   0xd   : > { %p2007_p5 = por %p109_p2, %p108_p0  ;;  %p2011_p6 = por %p115_p4, %p114_p3 }
   0xe   : > { %p1689_p7 = scmp.ge.s32.totalorder %s1914_s24, 1  ;;  %p225_p8 = scmp.lt.s32.totalorder %s1914_s24, 3 }
  0x10   : > { %p226_p9 = pnand %p1689_p7, %p225_p8 }
  0x11   : > { %p270_p10 = scmp.lt.s32.totalorder (!%p226_p9), %s1988_s25, 1  ;;  %v1916_v0 = vmov (!%p226_p9), 0.0   ;;  %v1917_v1 = vmov (!%p226_p9), 0   ;;  %v291_v2 = vld [vmem:[%s2739_s2] sm:$0xff] (!%p226_p9)  ;;  %s2754_s0 = sld [smem:[#allocation10_spill]] (!%p226_p9)  ;;  %vm384_vm0 = vcmask (!%p226_p9), 1043456  }
  0x12   : > { %229 = sbr.rel (%p226_p9) target bundleno = 569 (0x239), region = 32  ;;  %453 = vmatprep.mubr.f32.mxu0 (!%p226_p9), %v1916_v0  ;;  %483 = vmatprep.mubr.f32.mxu1 (!%p226_p9), %v1916_v0  ;;  %s1918_s16 = smov (!%p226_p9), 127   ;;  %v280_v5 = vld [vmem:[%s2738_s1] sm:$0xff] (!%p226_p9)  ;;  %vm353_vm1 = vcmask (!%p226_p9), 31744   ;;  %v285_v6 = vld [vmem:[%s2738_s1 + $0x28] sm:$0xff] (!%p226_p9)  ;;  %v293_v9 = vld [vmem:[%s2739_s2 + $0x10] sm:$0xff] (!%p226_p9) }
  0x13   : > { %1789 = vset.pattern.permute.xlu1 (!%p226_p9), %v1917_v1  ;;  %1790 = vset.pattern.permute.xlu0 (!%p226_p9), %v1917_v1  ;;  %v292_v7 = vld [vmem:[%s2739_s2 + $0x8] sm:$0xff] (!%p226_p9)  ;;  %v286_v10 = vld [vmem:[%s2738_s1 + $0x30] sm:$0xff] (!%p226_p9)  ;;  %v294_v11 = vld [vmem:[%s2739_s2 + $0x18] sm:$0xff] (!%p226_p9)  ;;  %vm577_vm2 = vcmask (!%p226_p9), 1039360   ;;  %vm584_vm3 = vcmask (!%p226_p9), 1031168   ;;  %vm588_vm4 = vcmask (!%p226_p9), 1031172  }
  0x14   : > { %303 = vperm.xlu1 (!%p226_p9), %1789, %v291_v2   ;;  %v281_v8 = vld [vmem:[%s2738_s1 + $0x8] sm:$0xff] (!%p226_p9)  ;;  %v282_v12 = vld [vmem:[%s2738_s1 + $0x10] sm:$0xff] (!%p226_p9)  ;;  %v287_v14 = vld [vmem:[%s2738_s1 + $0x38] sm:$0xff] (!%p226_p9)  ;;  %s1920_s17 = smov (!%p226_p9), 96   ;;  %s1921_s18 = smov (!%p226_p9), 112   ;;  %vm630_vm7 = vcmask (!%p226_p9), 106496  }
  0x15   : > { %v296_v13 = vld [vmem:[%s2739_s2 + $0x28] sm:$0xff] (!%p226_p9)  ;;  %v295_v15 = vld [vmem:[%s2739_s2 + $0x20] sm:$0xff] (!%p226_p9)  ;;  %v283_v16 = vld [vmem:[%s2738_s1 + $0x18] sm:$0xff] (!%p226_p9)  ;;  %s2185_s19 = sand.u32 (!%p226_p9), 1, %s1906_s22   ;;  %s1483_s13 = sand.u32 (!%p226_p9), 1, %s1988_s25  }
  0x16   : > { %v298_v17 = vld [vmem:[%s2739_s2 + $0x38] sm:$0xff] (!%p226_p9)  ;;  %v288_v18 = vld [vmem:[%s2738_s1 + $0x40] sm:$0xff] (!%p226_p9)  ;;  %v297_v19 = vld [vmem:[%s2739_s2 + $0x30] sm:$0xff] (!%p226_p9)  ;;  %s1690_s20 = sshll.u32 (!%p226_p9), %s2185_s19, 7  ;;  %s1691_s29 = sshll.u32 (!%p226_p9), %s2185_s19, 1 }
  0x17   : > { %v284_v20 = vld [vmem:[%s2738_s1 + $0x20] sm:$0xff] (!%p226_p9)  ;;  %v300_v21 = vld [vmem:[%s2739_s2 + $0x48] sm:$0xff] (!%p226_p9)  ;;  %vm589_vm5 = vmor (!%p226_p9), %vm588_vm4, %vm384_vm0  ;;  %s2190_s28 = scalar_lea.vmem (!%p226_p9), [#allocation3], %s1690_s20  ;;  %s2220_s11 = scalar_lea.vmem (!%p226_p9), [#allocation7], %s1691_s29 }
  0x18   : > { %308 = vperm.xlu1 (!%p226_p9), %1789, %v292_v7   ;;  %v289_v22 = vld [vmem:[%s2738_s1 + $0x48] sm:$0xff] (!%p226_p9)  ;;  %v299_v23 = vld [vmem:[%s2739_s2 + $0x40] sm:$0xff] (!%p226_p9)  ;;  %v536_v7 = vlaneseq (!%p226_p9)  ;;  %s2745_s20 = smov (!%p226_p9), 48   ;;  %s1723_s14 = sshll.u32 (!%p226_p9), %s1988_s25, 5 }
  0x19   : > { %s2019_s9 = scalar_select %p270_p10, %s1988_s25, 1 }
  0x1a   : > { %vm550_vm6 = vcmp.lt.s32.totalorder %v536_v7, 256  ;;  %s2513_s26 = scalar_lea.hbm %s2741_s4, %s1723_s14 }
  0x1b   : > { %s1720_s10 = sshll.u32 %s2019_s9, 3  ;;  %s1721_s12 = sshll.u32 %s2019_s9, 6 }
  0x1c   : > { %s274_s15 = scalar_lea.vmem %s2754_s0, %s1720_s10  ;;  %s1919_s10 = smov 126   ;;  %318 = vperm.xlu1 %1789, %v294_v11  }
  0x1d   : > { %v2028_v3 = vld [vmem:[%s274_s15] sm:$0xff]  ;;  %s2229_s15 = scalar_lea.vmem %s2743_s6, %s1721_s12  ;;  %s2750_s9 = smov 80  }
  0x1e   : > { %574 = vrot.lane.b32.xlu0 %v2028_v3, %s1918_s16  ;;  %v352_v4 = vcombine.high %v2028_v3, %v2028_v3  ;;  %s2748_s16 = smov 64   ;;  %s2747_s12 = smov 16  }
  0x1f   : > { %s2520_s0 = scalar_lea.hbm %s2742_s5, %s1723_s14 }
  0x20   : > { %1697 = vmatprep.subr.msk.mxu0 %vm384_vm0, %v352_v4  ;;  %1725 = vmatprep.subr.msk.mxu1 %vm384_vm0, %v352_v4 }
  0x21   : > { %1698 = vmatpush1.msk.msra.mxu0 %vm384_vm0, %v2028_v3  ;;  %1726 = vmatpush1.msk.msra.mxu1 %vm384_vm0, %v2028_v3 }
  0x22   : > { %581 = vrot.lane.b32.xlu0 %v2028_v3, %s1919_s10  ;;  %1699 = vmatmul.mubr.msk.f32.vlgmr.msra.gmra.mrb[0].mxu0 %vm353_vm1, %v280_v5  ;;  %v1922_v5 = vmov 1966171168   ;;  %s2216_s10 = scalar_lea.vmem [#allocation5], %s1691_s29  ;;  %s1926_s29 = smov 32  }
  0x23   : > { %1704 = vmatmul.mubr.msk.f32.vlgmr.msra.gmra.mrb[0].mxu1 %vm353_vm1, %v285_v6  ;;  %459 = vmatprep.mubr.f32.mxu0 %v1916_v0  ;;  %v534_v6 = vunpack.c.l.s4 %v1922_v5 }
  0x24   : > { %489 = vmatprep.mubr.f32.mxu1 %v1916_v0  ;;  %323 = vperm.xlu1 %1789, %v295_v15  }
  0x26   : > { %1700 = vmatmul.mubr.msk.f32.gmra.mrb[2].mxu0 %vm353_vm1, %v281_v8  ;;  %313 = vperm.xlu0 %1790, %v293_v9  }
  0x27   : > { %1705 = vmatmul.mubr.msk.f32.gmra.mrb[2].mxu1 %vm353_vm1, %v286_v10  ;;  %465 = vmatprep.mubr.f32.mxu0 %v1916_v0 }
  0x28   : > { %495 = vmatprep.mubr.f32.mxu1 %v1916_v0  ;;  %333 = vperm.xlu1 %1789, %v297_v19  }
  0x2a   : > { %1701 = vmatmul.mubr.msk.f32.gmra.mrb[4].mxu0 %vm353_vm1, %v282_v12  ;;  %328 = vperm.xlu0 %1790, %v296_v13  }
  0x2b   : > { %1706 = vmatmul.mubr.msk.f32.gmra.mrb[4].mxu1 %vm353_vm1, %v287_v14  ;;  %471 = vmatprep.mubr.f32.mxu0 %v1916_v0 }
  0x2c   : > { %501 = vmatprep.mubr.f32.mxu1 %v1916_v0  ;;  %343 = vperm.xlu1 %1789, %v299_v23  }
  0x2e   : > { %1702 = vmatmul.mubr.msk.f32.gmra.mrb[6].mxu0 %vm353_vm1, %v283_v16  ;;  %338 = vperm.xlu0 %1790, %v298_v17   ;;  %v535_v17 = vunpack.c.0.s8 %v534_v6 }
  0x2f   : > { %1707 = vmatmul.mubr.msk.f32.gmra.mrb[6].mxu1 %vm353_vm1, %v288_v18  ;;  %477 = vmatprep.mubr.f32.mxu0 %v1916_v0  ;;  %v537_v18 = vshrl.u32 %v536_v7, 7 }
  0x30   : > { %507 = vmatprep.mubr.f32.mxu1 %v1916_v0 }
  0x32   : > { %1703 = vmatmul.mubr.msk.f32.gmra.mrb[8].mxu0 %vm353_vm1, %v284_v20  ;;  %348 = vperm.xlu0 %1790, %v300_v21  }
  0x33   : > { %1708 = vmatmul.mubr.msk.f32.gmra.mrb[8].mxu1 %vm353_vm1, %v289_v22 }
  0x90   : > { %v575_v24 = vpop.permute.xlu0 %574 }
  0x91   : > { %v576_v25 = vrot.slane %v575_v24, 4 }
  0x93   : > { %v578_v26 = vsel %vm577_vm2, %v575_v24, %v576_v25  ;;  %v304_v46 = vpop.permute.xlu1 %303 }
  0x94   : > { %v582_v27 = vpop.permute.xlu0 %581  ;;  %v580_v29 = vmax.f32 %v2028_v3, %v578_v26 }
  0x95   : > { %v583_v28 = vrot.slane %v582_v27, 4 }
  0x97   : > { %v585_v30 = vsel %vm584_vm3, %v582_v27, %v583_v28  ;;  %v309_v47 = vpop.permute.xlu1 %308  ;;  %v2205_v28 = vsub.s32 %v535_v17, %v537_v18 }
  0x98   : > { %v587_v31 = vmax.f32 %v580_v29, %v585_v30 }
  0x9a   : > { %590 = vst.msk [vmem:[#allocation2] sm:$0xff] %vm589_vm5, %v587_v31 }
  0x9b   : > { %v319_v48 = vpop.permute.xlu1 %318 }
  0xa1   : > { %v2109_v32 = vld [vmem:[#allocation2] sm:$0xf]  ;;  %v2135_v37 = vld [vmem:[#allocation2 + $0x4] sm:$0xf] }
  0xa2   : > { %597 = vrot.lane.b32.xlu0 %v2109_v32, %s1920_s17  ;;  %593 = vrot.lane.b32.xlu1 %v2109_v32, %s1921_s18  ;;  %v2115_v33 = vld [vmem:[#allocation2] sm:$0xf]  ;;  %v2143_v39 = vld [vmem:[#allocation2 + $0x4] sm:$0xf] }
  0xa3   : > { %v2121_v34 = vld [vmem:[#allocation2] sm:$0xf]  ;;  %v2145_v40 = vld [vmem:[#allocation2 + $0x4] sm:$0xf]  ;;  %v2188_v50 = vpop.permute.xlu1 %323 }
  0xa4   : > { %v2127_v35 = vld [vmem:[#allocation2] sm:$0xf]  ;;  %v2151_v41 = vld [vmem:[#allocation2 + $0x4] sm:$0xf] }
  0xa5   : > { %v2129_v36 = vld [vmem:[#allocation2] sm:$0xf]  ;;  %v2153_v42 = vld [vmem:[#allocation2 + $0x4] sm:$0xf]  ;;  %v314_v49 = vpop.permute.xlu0 %313 }
  0xa6   : > { %699 = vrot.lane.b32.xlu0 %v2115_v33, %s1921_s18  ;;  %637 = vrot.lane.b32.xlu1 %v2115_v33, %s1920_s17  ;;  %v2137_v38 = vld [vmem:[#allocation2] sm:$0xf]  ;;  %v1344_v43 = vld [vmem:[#allocation2 + $0x4] sm:$0xf] }
  0xa7   : > { %v2166_v44 = vld [vmem:[#allocation2 + $0x4] sm:$0xf]  ;;  %v334_v60 = vpop.permute.xlu1 %333 }
  0xa8   : > { %v1411_v45 = vld [vmem:[#allocation2 + $0x4] sm:$0xf] }
  0xa9   : > { %v329_v52 = vpop.permute.xlu0 %328 }
  0xaa   : > { %766 = vrot.lane.b32.xlu0 %v2121_v34, %s1921_s18  ;;  %704 = vrot.lane.b32.xlu1 %v2121_v34, %s1920_s17 }
  0xab   : > { %v344_v19 = vpop.permute.xlu1 %343 }
  0xad   : > { %v339_v9 = vpop.permute.xlu0 %338 }
  0xae   : > { %900 = vrot.lane.b32.xlu0 %v2127_v35, %s1921_s18  ;;  %833 = vrot.lane.b32.xlu1 %v2129_v36, %s1921_s18 }
  0xb1   : > { %v349_v29 = vpop.permute.xlu0 %348 }
  0xb2   : > { %1034 = vrot.lane.b32.xlu0 %v2135_v37, %s1921_s18  ;;  %967 = vrot.lane.b32.xlu1 %v2137_v38, %s1921_s18 }
  0xb6   : > { %1211 = vrot.lane.b32.xlu0 %v2143_v39, %s1921_s18  ;;  %1144 = vrot.lane.b32.xlu1 %v2145_v40, %s1921_s18 }
  0xba   : > { %1345 = vrot.lane.b32.xlu0 %v2151_v41, %s1921_s18  ;;  %1278 = vrot.lane.b32.xlu1 %v2153_v42, %s1921_s18 }
  0xbe   : > { %771 = vrot.lane.b32.xlu0 %v2129_v36, %s1920_s17  ;;  %1412 = vrot.lane.b32.xlu1 %v1344_v43, %s1921_s18 }
  0xc2   : > { %905 = vrot.lane.b32.xlu0 %v2137_v38, %s1920_s17  ;;  %838 = vrot.lane.b32.xlu1 %v2127_v35, %s1920_s17 }
  0xc6   : > { %1039 = vrot.lane.b32.xlu0 %v2166_v44, %s1920_s17  ;;  %972 = vrot.lane.b32.xlu1 %v2135_v37, %s1920_s17 }
  0xca   : > { %1216 = vrot.lane.b32.xlu0 %v2153_v42, %s1920_s17  ;;  %1149 = vrot.lane.b32.xlu1 %v2143_v39, %s1920_s17 }
  0xce   : > { %1350 = vrot.lane.b32.xlu0 %v1344_v43, %s1920_s17  ;;  %1283 = vrot.lane.b32.xlu1 %v2151_v41, %s1920_s17 }
  0xd2   : > { %1101 = vrot.lane.b32.xlu0 %v2166_v44, %s1921_s18  ;;  %1417 = vrot.lane.b32.xlu1 %v1411_v45, %s1920_s17 }
  0xd6   : > { %1106 = vrot.lane.b32.xlu1 %v2145_v40, %s1920_s17 }
  0xf5   : > { %v455_v51 = vpop.f32.mrb[0].mxu0 }
  0xf6   : > { %v456_v53 = vadd.f32 %v455_v51, %v304_v46  ;;  %v485_v54 = vpop.f32.mrb[0].mxu1  ;;  %v457_v55 = vpop.f32.mrb[1].mxu0 }
  0xf7   : > { %v458_v56 = vadd.f32 %v457_v55, %v304_v46  ;;  %v487_v57 = vpop.f32.mrb[1].mxu1  ;;  %v486_v58 = vadd.f32 %v485_v54, %v329_v52 }
  0xf8   : > { %514 = vst [vmem:[%s2190_s28] sm:$0xff] %v456_v53  ;;  %v488_v59 = vadd.f32 %v487_v57, %v329_v52 }
  0xf9   : > { %515 = vst [vmem:[%s2190_s28 + $0x8] sm:$0xff] %v458_v56  ;;  %v461_v61 = vpop.f32.mrb[2].mxu0  ;;  %524 = vst [vmem:[%s2190_s28 + $0x50] sm:$0xff] %v486_v58 }
  0xfa   : > { %v462_v62 = vadd.f32 %v461_v61, %v309_v47  ;;  %v491_v63 = vpop.f32.mrb[2].mxu1  ;;  %525 = vst [vmem:[%s2190_s28 + $0x58] sm:$0xff] %v488_v59  ;;  %v463_v0 = vpop.f32.mrb[3].mxu0 }
  0xfb   : > { %v492_v1 = vadd.f32 %v491_v63, %v334_v60  ;;  %v464_v2 = vadd.f32 %v463_v0, %v309_v47  ;;  %v493_v3 = vpop.f32.mrb[3].mxu1 }
  0xfc   : > { %516 = vst [vmem:[%s2190_s28 + $0x10] sm:$0xff] %v462_v62  ;;  %v494_v4 = vadd.f32 %v493_v3, %v334_v60  ;;  %v2233_v3 = vsub.s32 0, %v537_v18 }
  0xfd   : > { %526 = vst [vmem:[%s2190_s28 + $0x60] sm:$0xff] %v492_v1  ;;  %517 = vst [vmem:[%s2190_s28 + $0x18] sm:$0xff] %v464_v2  ;;  %v467_v8 = vpop.f32.mrb[4].mxu0 }
  0xfe   : > { %527 = vst [vmem:[%s2190_s28 + $0x68] sm:$0xff] %v494_v4  ;;  %v468_v10 = vadd.f32 %v467_v8, %v314_v49  ;;  %v497_v11 = vpop.f32.mrb[4].mxu1  ;;  %v469_v12 = vpop.f32.mrb[5].mxu0 }
  0xff   : > { %v498_v13 = vadd.f32 %v497_v11, %v339_v9  ;;  %v470_v14 = vadd.f32 %v469_v12, %v314_v49  ;;  %v499_v15 = vpop.f32.mrb[5].mxu1 }
 0x100   : > { %518 = vst [vmem:[%s2190_s28 + $0x20] sm:$0xff] %v468_v10  ;;  %v500_v16 = vadd.f32 %v499_v15, %v339_v9 }
 0x101   : > { %528 = vst [vmem:[%s2190_s28 + $0x70] sm:$0xff] %v498_v13  ;;  %519 = vst [vmem:[%s2190_s28 + $0x28] sm:$0xff] %v470_v14  ;;  %v473_v20 = vpop.f32.mrb[6].mxu0 }
 0x102   : > { %529 = vst [vmem:[%s2190_s28 + $0x78] sm:$0xff] %v500_v16  ;;  %v474_v21 = vadd.f32 %v473_v20, %v319_v48  ;;  %v503_v22 = vpop.f32.mrb[6].mxu1  ;;  %v475_v23 = vpop.f32.mrb[7].mxu0 }
 0x103   : > { %v504_v24 = vadd.f32 %v503_v22, %v344_v19  ;;  %v476_v25 = vadd.f32 %v475_v23, %v319_v48  ;;  %v505_v26 = vpop.f32.mrb[7].mxu1 }
 0x104   : > { %520 = vst [vmem:[%s2190_s28 + $0x30] sm:$0xff] %v474_v21  ;;  %v506_v27 = vadd.f32 %v505_v26, %v344_v19 }
 0x105   : > { %521 = vst [vmem:[%s2190_s28 + $0x38] sm:$0xff] %v476_v25  ;;  %v479_v30 = vpop.f32.mrb[8].mxu0 }
 0x106   : > { %v532_v31 = vcombine.low %v504_v24, %v506_v27  ;;  %v480_v43 = vadd.f32 %v479_v30, %v2188_v50  ;;  %v509_v45 = vpop.f32.mrb[8].mxu1  ;;  %v481_v46 = vpop.f32.mrb[9].mxu0 }
 0x107   : > { %v510_v47 = vadd.f32 %v509_v45, %v349_v29  ;;  %v482_v49 = vadd.f32 %v481_v46, %v2188_v50  ;;  %v511_v48 = vpop.f32.mrb[9].mxu1 }
 0x108   : > { %v539_v51 = vrot.slane %v532_v31, %v2205_v28  ;;  %522 = vst [vmem:[%s2190_s28 + $0x40] sm:$0xff] %v480_v43  ;;  %v512_v52 = vadd.f32 %v511_v48, %v349_v29 }
 0x109   : > { %523 = vst [vmem:[%s2190_s28 + $0x48] sm:$0xff] %v482_v49 }
 0x10a   : > { %v546_v53 = vrot.slane %v539_v51, %v2205_v28  ;;  %v555_v54 = vcombine.low %v510_v47, %v512_v52 }
 0x10c   : > { %v562_v55 = vrot.slane %v555_v54, %v2205_v28  ;;  %552 = vst.msk [vmem:[%s2216_s10] sm:$0x3] %vm550_vm6, %v546_v53 }
 0x10e   : > { %v569_v56 = vrot.slane %v562_v55, %v2205_v28 }
 0x110   : > { %571 = vst.msk [vmem:[%s2220_s11] sm:$0x3] %vm550_vm6, %v569_v56 }
 0x114   : > { %v594_v50 = vpop.permute.xlu1 %593  ;;  %v598_v57 = vpop.permute.xlu0 %597 }
 0x115   : > { %v596_v58 = vmax.f32 %v2109_v32, %v594_v50 }
 0x117   : > { %v600_v59 = vmax.f32 %v596_v58, %v598_v57 }
 0x118   : > { %v638_v60 = vpop.permute.xlu1 %637  ;;  %v700_v61 = vpop.permute.xlu0 %699 }
 0x119   : > { %v608_v62 = vrot.slane %v600_v59, %v2205_v28  ;;  %v640_v63 = vmax.f32 %v596_v58, %v638_v60  ;;  %v702_v4 = vmax.f32 %v2109_v32, %v700_v61 }
 0x11b   : > { %v609_v0 = vcombine.high %v608_v62, %v608_v62  ;;  %v616_v1 = vrot.slane %v608_v62, %v2205_v28  ;;  %v648_v2 = vrot.slane %v640_v63, %v2205_v28 }
 0x11c   : > { %v705_v5 = vpop.permute.xlu1 %704  ;;  %v767_v6 = vpop.permute.xlu0 %766 }
 0x11d   : > { %v623_v7 = vrot.slane %v609_v0, %v2205_v28  ;;  %v624_v8 = vcombine.high %v616_v1, %v616_v1  ;;  %631 = vst.msk [vmem:[%s2229_s15] sm:$0x1] %vm630_vm7, %v616_v1  ;;  %v649_v9 = vcombine.high %v648_v2, %v648_v2  ;;  %v2240_v10 = vrot.slane %v648_v2, %v2205_v28 }
 0x11e   : > { %v707_v11 = vmax.f32 %v702_v4, %v705_v5  ;;  %v769_v43 = vmax.f32 %v2115_v33, %v767_v6 }
 0x11f   : > { %v625_v12 = vcombine.high %v623_v7, %v623_v7  ;;  %632 = vst.msk [vmem:[%s2229_s15 + $0x10] sm:$0x1] %vm630_vm7, %v623_v7  ;;  %633 = vst.msk [vmem:[%s2229_s15 + $0x20] sm:$0x1] %vm630_vm7, %v624_v8  ;;  %v669_v32 = vrot.slane %v2240_v10, %v2233_v3  ;;  %v663_v13 = vrot.slane %v649_v9, %v2205_v28 }
 0x120   : > { %v715_v14 = vrot.slane %v707_v11, %v2205_v28  ;;  %v834_v15 = vpop.permute.xlu1 %833  ;;  %v901_v16 = vpop.permute.xlu0 %900 }
 0x121   : > { %634 = vst.msk [vmem:[%s2229_s15 + $0x30] sm:$0x1] %vm630_vm7, %v625_v12  ;;  %682 = vrot.lane.b32.xlu0 %v669_v32, %s1921_s18  ;;  %v673_v17 = vrot.slane %v663_v13, %v2233_v3  ;;  %v665_v20 = vcombine.high %v663_v13, %v663_v13  ;;  %v836_v49 = vmax.f32 %v2121_v34, %v834_v15 }
 0x122   : > { %v716_v18 = vcombine.high %v715_v14, %v715_v14  ;;  %v2255_v19 = vrot.slane %v715_v14, %v2205_v28  ;;  %v903_v48 = vmax.f32 %v2129_v36, %v901_v16 }
 0x123   : > { %684 = vrot.lane.b32.xlu1 %v673_v17, %s1921_s18  ;;  %v2264_v25 = vrot.slane %v665_v20, %v2233_v3 }
 0x124   : > { %v968_v21 = vpop.permute.xlu1 %967  ;;  %v1035_v22 = vpop.permute.xlu0 %1034  ;;  %v736_v23 = vrot.slane %v2255_v19, %v2233_v3  ;;  %v2261_v24 = vrot.slane %v716_v18, %v2205_v28 }
 0x125   : > { %v970_v36 = vmax.f32 %v2127_v35, %v968_v21  ;;  %v1037_v59 = vmax.f32 %v2137_v38, %v1035_v22 }
 0x126   : > { %749 = vrot.lane.b32.xlu0 %v736_v23, %s1920_s17  ;;  %v740_v26 = vrot.slane %v2261_v24, %v2233_v3 }
 0x128   : > { %751 = vrot.lane.b32.xlu1 %v740_v26, %s1920_s17  ;;  %v1145_v27 = vpop.permute.xlu1 %1144  ;;  %v1212_v29 = vpop.permute.xlu0 %1211 }
 0x129   : > { %v1147_v6 = vmax.f32 %v2166_v44, %v1145_v27  ;;  %v1214_v44 = vmax.f32 %v2145_v40, %v1212_v29 }
 0x12c   : > { %v2270_v30 = vpop.permute.xlu1 %1278  ;;  %v2272_v31 = vpop.permute.xlu0 %1345 }
 0x12d   : > { %v1281_v29 = vmax.f32 %v2143_v39, %v2270_v30 }
 0x130   : > { %v2275_v45 = vpop.permute.xlu1 %1412  ;;  %v772_v46 = vpop.permute.xlu0 %771 }
 0x131   : > { %v774_v47 = vmax.f32 %v769_v43, %v772_v46 }
 0x133   : > { %v782_v51 = vrot.slane %v774_v47, %v2205_v28 }
 0x134   : > { %v839_v52 = vpop.permute.xlu1 %838  ;;  %v906_v53 = vpop.permute.xlu0 %905 }
 0x135   : > { %v783_v54 = vcombine.high %v782_v51, %v782_v51  ;;  %v2281_v55 = vrot.slane %v782_v51, %v2205_v28  ;;  %v841_v56 = vmax.f32 %v836_v49, %v839_v52  ;;  %v908_v50 = vmax.f32 %v903_v48, %v906_v53 }
 0x137   : > { %v849_v33 = vrot.slane %v841_v56, %v2205_v28  ;;  %v916_v57 = vrot.slane %v908_v50, %v2205_v28  ;;  %v803_v58 = vrot.slane %v2281_v55, %v2233_v3  ;;  %v2288_v34 = vrot.slane %v783_v54, %v2205_v28 }
 0x138   : > { %v973_v60 = vpop.permute.xlu1 %972  ;;  %v1040_v61 = vpop.permute.xlu0 %1039  ;;  %v1348_v54 = vmax.f32 %v2153_v42, %v2272_v31 }
 0x139   : > { %v850_v62 = vcombine.high %v849_v33, %v849_v33  ;;  %v2293_v63 = vrot.slane %v849_v33, %v2205_v28  ;;  %816 = vrot.lane.b32.xlu0 %v803_v58, %s2750_s9  ;;  %v917_v0 = vcombine.high %v916_v57, %v916_v57  ;;  %v975_v1 = vmax.f32 %v970_v36, %v973_v60 }
 0x13a   : > { %v1042_v2 = vmax.f32 %v1037_v59, %v1040_v61  ;;  %v807_v4 = vrot.slane %v2288_v34, %v2233_v3  ;;  %v2299_v5 = vrot.slane %v916_v57, %v2205_v28  ;;  %v1415_v60 = vmax.f32 %v2151_v41, %v2275_v45 }
 0x13b   : > { %v870_v35 = vrot.slane %v2293_v63, %v2233_v3  ;;  %v2304_v38 = vrot.slane %v850_v62, %v2205_v28  ;;  %v983_v7 = vrot.slane %v975_v1, %v2205_v28  ;;  %v2314_v14 = vrot.slane %v917_v0, %v2205_v28 }
 0x13c   : > { %818 = vrot.lane.b32.xlu1 %v807_v4, %s2750_s9  ;;  %v1150_v8 = vpop.permute.xlu1 %1149  ;;  %v1217_v9 = vpop.permute.xlu0 %1216  ;;  %v1050_v32 = vrot.slane %v1042_v2, %v2205_v28  ;;  %v937_v16 = vrot.slane %v2299_v5, %v2233_v3 }
 0x13d   : > { %883 = vrot.lane.b32.xlu0 %v870_v35, %s2748_s16  ;;  %v874_v11 = vrot.slane %v2304_v38, %v2233_v3  ;;  %v984_v12 = vcombine.high %v983_v7, %v983_v7  ;;  %v1152_v13 = vmax.f32 %v1147_v6, %v1150_v8  ;;  %v2318_v15 = vrot.slane %v983_v7, %v2205_v28 }
 0x13e   : > { %v1219_v20 = vmax.f32 %v1214_v44, %v1217_v9  ;;  %v1051_v21 = vcombine.high %v1050_v32, %v1050_v32  ;;  %v941_v40 = vrot.slane %v2314_v14, %v2233_v3  ;;  %v2331_v26 = vrot.slane %v1050_v32, %v2205_v28 }
 0x13f   : > { %v1160_v22 = vrot.slane %v1152_v13, %v2205_v28  ;;  %v2328_v23 = vrot.slane %v984_v12, %v2205_v28  ;;  %v1004_v27 = vrot.slane %v2318_v15, %v2233_v3 }
 0x140   : > { %885 = vrot.lane.b32.xlu1 %v874_v11, %s2748_s16  ;;  %v1284_v17 = vpop.permute.xlu1 %1283  ;;  %v1351_v18 = vpop.permute.xlu0 %1350  ;;  %v1227_v47 = vrot.slane %v1219_v20, %v2205_v28  ;;  %v2343_v52 = vrot.slane %v1051_v21, %v2205_v28  ;;  %v1071_v30 = vrot.slane %v2331_v26, %v2233_v3 }
 0x141   : > { %950 = vrot.lane.b32.xlu0 %v937_v16, %s2745_s20  ;;  %v1161_v49 = vcombine.high %v1160_v22, %v1160_v22  ;;  %v1286_v48 = vmax.f32 %v1281_v29, %v1284_v17  ;;  %v1008_v51 = vrot.slane %v2328_v23, %v2233_v3  ;;  %v2346_v53 = vrot.slane %v1160_v22, %v2205_v28 }
 0x142   : > { %v1228_v50 = vcombine.high %v1227_v47, %v1227_v47  ;;  %v1353_v58 = vmax.f32 %v1348_v54, %v1351_v18  ;;  %v2362_v59 = vrot.slane %v1227_v47, %v2205_v28  ;;  %v664_v29 = vcombine.high %v2240_v10, %v2240_v10 }
 0x143   : > { %v1294_v57 = vrot.slane %v1286_v48, %v2205_v28  ;;  %v2359_v36 = vrot.slane %v1161_v49, %v2205_v28  ;;  %v1181_v31 = vrot.slane %v2346_v53, %v2233_v3  ;;  %v731_v47 = vcombine.high %v2255_v19, %v2255_v19 }
 0x144   : > { %952 = vrot.lane.b32.xlu1 %v941_v40, %s2745_s20  ;;  %v1418_v43 = vpop.permute.xlu1 %1417  ;;  %v1102_v46 = vpop.permute.xlu0 %1101  ;;  %v2373_v0 = vrot.slane %v1228_v50, %v2205_v28  ;;  %v1361_v2 = vrot.slane %v1353_v58, %v2205_v28  ;;  %v1248_v7 = vrot.slane %v2362_v59, %v2233_v3  ;;  %v798_v49 = vcombine.high %v2281_v55, %v2281_v55 }
 0x145   : > { %1017 = vrot.lane.b32.xlu0 %v1004_v27, %s1926_s29  ;;  %v1104_v39 = vmax.f32 %v2135_v37, %v1102_v46  ;;  %v1075_v37 = vrot.slane %v2343_v52, %v2233_v3  ;;  %v1295_v1 = vcombine.high %v1294_v57, %v1294_v57  ;;  %v1420_v4 = vmax.f32 %v1415_v60, %v1418_v43 }
 0x146   : > { %v1185_v35 = vrot.slane %v2359_v36, %v2233_v3  ;;  %v2379_v41 = vrot.slane %v1294_v57, %v2205_v28  ;;  %v1362_v9 = vcombine.high %v1361_v2, %v1361_v2  ;;  %v1252_v12 = vrot.slane %v2373_v0, %v2233_v3 }
 0x147   : > { %v1428_v11 = vrot.slane %v1420_v4, %v2205_v28  ;;  %v2396_v32 = vrot.slane %v1295_v1, %v2205_v28  ;;  %v2399_v13 = vrot.slane %v1361_v2, %v2205_v28  ;;  %v677_v46 = vrot.slane %v664_v29, %v2233_v3 }
 0x148   : > { %1019 = vrot.lane.b32.xlu1 %v1008_v51, %s1926_s29  ;;  %v1107_v56 = vpop.permute.xlu1 %1106  ;;  %v1315_v44 = vrot.slane %v2379_v41, %v2233_v3  ;;  %v2410_v18 = vrot.slane %v1362_v9, %v2205_v28  ;;  %v744_v10 = vrot.slane %v731_v47, %v2233_v3  ;;  %v799_v19 = vcombine.high %v2288_v34, %v2288_v34 }
 0x149   : > { %v1109_v33 = vmax.f32 %v1104_v39, %v1107_v56  ;;  %1084 = vrot.lane.b32.xlu0 %v1071_v30, %s2747_s12  ;;  %v1429_v16 = vcombine.high %v1428_v11, %v1428_v11  ;;  %v1319_v17 = vrot.slane %v2396_v32, %v2233_v3  ;;  %v2413_v20 = vrot.slane %v1428_v11, %v2205_v28 }
 0x14a   : > { %v1382_v21 = vrot.slane %v2399_v13, %v2233_v3  ;;  %v1386_v22 = vrot.slane %v2410_v18, %v2233_v3  ;;  %v811_v51 = vrot.slane %v798_v49, %v2233_v3  ;;  %v815_v55 = vrot.slane %v799_v19, %v2233_v3 }
 0x14b   : > { %v1117_v42 = vrot.slane %v1109_v33, %v2205_v28  ;;  %v2422_v40 = vrot.slane %v1429_v16, %v2205_v28  ;;  %v1449_v27 = vrot.slane %v2413_v20, %v2233_v3  ;;  %v932_v30 = vcombine.high %v2299_v5, %v2299_v5 }
 0x14c   : > { %1086 = vrot.lane.b32.xlu1 %v1075_v37, %s2747_s12  ;;  %v999_v56 = vcombine.high %v2318_v15, %v2318_v15  ;;  %v1066_v33 = vcombine.high %v2331_v26, %v2331_v26  ;;  %v1067_v15 = vcombine.high %v2343_v52, %v2343_v52  ;;  %v1176_v58 = vcombine.high %v2346_v53, %v2346_v53 }
 0x14d   : > { %v1118_v61 = vcombine.high %v1117_v42, %v1117_v42  ;;  %v1125_v62 = vrot.slane %v1117_v42, %v2205_v28  ;;  %1194 = vrot.lane.b32.xlu0 %v1181_v31, %s1921_s18  ;;  %v1453_v43 = vrot.slane %v2422_v40, %v2233_v3  ;;  %v945_v54 = vrot.slane %v932_v30, %v2233_v3 }
 0x14e   : > { %v1012_v50 = vrot.slane %v999_v56, %v2233_v3  ;;  %v1079_v57 = vrot.slane %v1066_v33, %v2233_v3  ;;  %v1177_v26 = vcombine.high %v2359_v36, %v2359_v36  ;;  %v1189_v37 = vrot.slane %v1176_v58, %v2233_v3 }
 0x14f   : > { %v1132_v45 = vrot.slane %v1118_v61, %v2205_v28  ;;  %v1133_v6 = vcombine.high %v1125_v62, %v1125_v62  ;;  %1139 = vst.msk [vmem:[%s2229_s15 + $0x8] sm:$0x1] %vm630_vm7, %v1125_v62  ;;  %v732_v28 = vcombine.high %v2261_v24, %v2261_v24  ;;  %v865_v24 = vcombine.high %v2293_v63, %v2293_v63 }
 0x150   : > { %1196 = vrot.lane.b32.xlu1 %v1185_v35, %s1921_s18  ;;  %v933_v63 = vcombine.high %v2314_v14, %v2314_v14  ;;  %v1243_v52 = vcombine.high %v2362_v59, %v2362_v59  ;;  %v1193_v53 = vrot.slane %v1177_v26, %v2233_v3  ;;  %v1244_v42 = vcombine.high %v2373_v0, %v2373_v0 }
 0x151   : > { %v1134_v8 = vcombine.high %v1132_v45, %v1132_v45  ;;  %1140 = vst.msk [vmem:[%s2229_s15 + $0x18] sm:$0x1] %vm630_vm7, %v1132_v45  ;;  %1141 = vst.msk [vmem:[%s2229_s15 + $0x28] sm:$0x1] %vm630_vm7, %v1133_v6  ;;  %1261 = vrot.lane.b32.xlu0 %v1248_v7, %s1920_s17  ;;  %v748_v48 = vrot.slane %v732_v28, %v2233_v3  ;;  %v878_v39 = vrot.slane %v865_v24, %v2233_v3 }
 0x152   : > { %v949_v5 = vrot.slane %v933_v63, %v2233_v3  ;;  %v1256_v31 = vrot.slane %v1243_v52, %v2233_v3  ;;  %v1310_v36 = vcombine.high %v2379_v41, %v2379_v41  ;;  %v1260_v59 = vrot.slane %v1244_v42, %v2233_v3 }
 0x153   : > { %1142 = vst.msk [vmem:[%s2229_s15 + $0x38] sm:$0x1] %vm630_vm7, %v1134_v8  ;;  %v1311_v60 = vcombine.high %v2396_v32, %v2396_v32  ;;  %v1377_v62 = vcombine.high %v2399_v13, %v2399_v13  ;;  %v1378_v1 = vcombine.high %v2410_v18, %v2410_v18  ;;  %v1444_v4 = vcombine.high %v2413_v20, %v2413_v20 }
 0x154   : > { %1263 = vrot.lane.b32.xlu1 %v1252_v12, %s1920_s17  ;;  %v1323_v61 = vrot.slane %v1310_v36, %v2233_v3 }
 0x155   : > { %1328 = vrot.lane.b32.xlu0 %v1315_v44, %s2750_s9  ;;  %v1327_v0 = vrot.slane %v1311_v60, %v2233_v3  ;;  %v1390_v2 = vrot.slane %v1377_v62, %v2233_v3 }
 0x158   : > { %1330 = vrot.lane.b32.xlu1 %v1319_v17, %s2750_s9 }
 0x159   : > { %1395 = vrot.lane.b32.xlu0 %v1382_v21, %s2748_s16 }
 0x15c   : > { %1397 = vrot.lane.b32.xlu1 %v1386_v22, %s2748_s16 }
 0x15d   : > { %1462 = vrot.lane.b32.xlu0 %v1449_v27, %s2745_s20 }
 0x160   : > { %1464 = vrot.lane.b32.xlu1 %v1453_v43, %s2745_s20 }
 0x161   : > { %686 = vrot.lane.b32.xlu0 %v677_v46, %s1921_s18 }
 0x164   : > { %688 = vrot.lane.b32.xlu1 %v2264_v25, %s1921_s18  ;;  %v866_v25 = vcombine.high %v2304_v38, %v2304_v38  ;;  %v1000_v38 = vcombine.high %v2328_v23, %v2328_v23  ;;  %v1083_v23 = vrot.slane %v1067_v15, %v2233_v3 }
 0x165   : > { %753 = vrot.lane.b32.xlu0 %v744_v10, %s1920_s17 }
 0x166   : > { %v882_v34 = vrot.slane %v866_v25, %v2233_v3  ;;  %v1016_v14 = vrot.slane %v1000_v38, %v2233_v3 }
 0x168   : > { %755 = vrot.lane.b32.xlu1 %v748_v48, %s1920_s17 }
 0x169   : > { %820 = vrot.lane.b32.xlu0 %v811_v51, %s2750_s9 }
 0x16c   : > { %822 = vrot.lane.b32.xlu1 %v815_v55, %s2750_s9 }
 0x16d   : > { %887 = vrot.lane.b32.xlu0 %v878_v39, %s2748_s16 }
 0x170   : > { %889 = vrot.lane.b32.xlu1 %v882_v34, %s2748_s16 }
 0x171   : > { %954 = vrot.lane.b32.xlu0 %v945_v54, %s2745_s20 }
 0x174   : > { %956 = vrot.lane.b32.xlu1 %v949_v5, %s2745_s20  ;;  %s1524_s20 = sshll.u32 %s2216_s10, 4  ;;  %s2531_s10 = scalar_lea.sflag [#allocation6], %s1483_s13  ;;  %s2525_s20 = int_to_ptr.vmem [resolvable:$true] %s1524_s20 }
 0x175   : > { %1021 = vrot.lane.b32.xlu0 %v1012_v50, %s1926_s29  ;;  %s1792_s16 = scalar_lea.vmem %s2525_s20, 32 }
 0x176   : > { %p1793_p11 = scmp.ne.s32.totalorder %s2525_s20, %s1792_s16 }
 0x178   : > { %1023 = vrot.lane.b32.xlu1 %v1016_v14, %s1926_s29  ;;  %p1794_p12 = pnand %p1793_p11, %p2007_p5 }
 0x179   : > { %1088 = vrot.lane.b32.xlu0 %v1079_v57, %s2747_s12 }
 0x17a   : > { %p1795_p13 = pneg %p1794_p12 }
 0x17c   : > { %1090 = vrot.lane.b32.xlu1 %v1083_v23, %s2747_s12  ;;  %s1928_s12 = smov [#allocation5]  }
 0x17d   : > { %1198 = vrot.lane.b32.xlu0 %v1189_v37, %s1921_s18  ;;  %s1796_s14 = sshll.u32 %s1928_s12, 4  ;;  %s1797_s14 = int_to_ptr.vmem [resolvable:$false] %s1796_s14 }
 0x17e   : > { %s1798_s29 = scalar_lea.vmem %s1797_s14, 64  ;;  %p1799_p0 = scmp.lt.s32.totalorder %s2525_s20, %s1797_s14 }
 0x17f   : > { %p1800_p1 = scmp.lt.s32.totalorder %s1798_s29, %s1792_s16 }
 0x180   : > { %1200 = vrot.lane.b32.xlu1 %v1193_v53, %s1921_s18 }
 0x181   : > { %1265 = vrot.lane.b32.xlu0 %v1256_v31, %s1920_s17  ;;  %p1801_p2 = por %p1800_p1, %p1799_p0 }
 0x183   : > { %p1802_p3 = pnand %p1801_p2, %p1795_p13 }
 0x184   : > { %1267 = vrot.lane.b32.xlu1 %v1260_v59, %s1920_s17 }
 0x185   : > { %1332 = vrot.lane.b32.xlu0 %v1323_v61, %s2750_s9 }
 0x186   : > { %1805 = shalt.err (!%p1802_p3)
}
 0x187   : > { %s1806_s13 = scalar_lea.hbm %s2513_s26, 32  ;;  %s1810_s12 = scalar_lea.hbm %s2741_s4, 64 }
 0x188   : > { %p1807_p4 = scmp.ne.s32.totalorder %s2513_s26, %s1806_s13  ;;  %p1811_p9 = scmp.lt.u32.totalorder %s2513_s26, %s2741_s4 }
 0x189   : > { %p1812_p10 = scmp.lt.u32.totalorder %s1810_s12, %s1806_s13  ;;  %p1814_p12 = scmp.lt.u32.totalorder %s1806_s13, %s2513_s26 }
 0x18a   : > { %p1808_p7 = pnand %p1807_p4, %p2007_p5 }
 0x18b   : > { %p1813_p11 = por %p1812_p10, %p1811_p9 }
 0x18c   : > { %p1809_p8 = pneg %p1808_p7 }
 0x18d   : > { %p1815_p13 = por %p1814_p12, %p1813_p11 }
 0x18f   : > { %p1816_p0 = pnand %p1815_p13, %p1809_p8 }
 0x191   : > { %1819 = shalt.err (!%p1816_p0)
}
 0x192   : > { %1728 = dma.vmem_to_hbm [thread:$0]  (%p2007_p5), %s2525_s20, 32, %s2513_s26, %s2531_s10   ;;  %v1394_v35 = vrot.slane %v1378_v1, %v2233_v3  ;;  %v1445_v41 = vcombine.high %v2422_v40, %v2422_v40 }
 0x193   : > { %s2755_s17 = smov 80   ;;  %s2756_s9 = sshll.u32 %s1988_s25, 11 }
 0x194   : > { %1334 = vrot.lane.b32.xlu1 %v1327_v0, %s2755_s17  ;;  %s2561_s13 = scalar_lea.hbm %s2740_s3, %s2756_s9  ;;  %s1507_s18 = sshll.u32 %s2190_s28, 4  ;;  %s2565_s18 = int_to_ptr.vmem [resolvable:$true] %s1507_s18 }
 0x195   : > { %s2757_s12 = smov 64   ;;  %s1479_s26 = scalar_lea.sflag [#allocation4], %s2185_s19 }
 0x196   : > { %1399 = vrot.lane.b32.xlu0 %v1390_v2, %s2757_s12  ;;  %s1820_s25 = scalar_lea.vmem %s2565_s18, 2048  ;;  %s1929_s20 = smov [#allocation3]  }
 0x197   : > { %p1821_p1 = scmp.ne.s32.totalorder %s2565_s18, %s1820_s25  ;;  %s1824_s28 = sshll.u32 %s1929_s20, 4  ;;  %s1825_s28 = int_to_ptr.vmem [resolvable:$false] %s1824_s28 }
 0x198   : > { %s1826_s14 = scalar_lea.vmem %s1825_s28, 4096  ;;  %p1827_p4 = scmp.lt.s32.totalorder %s2565_s18, %s1825_s28 }
 0x199   : > { %p1822_p2 = pnand %p1821_p1, %p2007_p5  ;;  %p1828_p7 = scmp.lt.s32.totalorder %s1826_s14, %s1820_s25 }
 0x19b   : > { %p1823_p3 = pneg %p1822_p2  ;;  %p1829_p8 = por %p1828_p7, %p1827_p4 }
 0x19d   : > { %p1830_p9 = pnand %p1829_p8, %p1823_p3 }
 0x19f   : > { %1833 = shalt.err (!%p1830_p9)
}
 0x1a0   : > { %s1834_s17 = scalar_lea.hbm %s2561_s13, 2048  ;;  %s1838_s29 = scalar_lea.hbm %s2740_s3, 4096 }
 0x1a1   : > { %p1835_p10 = scmp.ne.s32.totalorder %s2561_s13, %s1834_s17  ;;  %p1839_p13 = scmp.lt.u32.totalorder %s2561_s13, %s2740_s3 }
 0x1a2   : > { %p1840_p0 = scmp.lt.u32.totalorder %s1838_s29, %s1834_s17  ;;  %p1842_p2 = scmp.lt.u32.totalorder %s1834_s17, %s2561_s13 }
 0x1a3   : > { %p1836_p11 = pnand %p1835_p10, %p2007_p5 }
 0x1a4   : > { %p1841_p1 = por %p1840_p0, %p1839_p13 }
 0x1a5   : > { %p1837_p12 = pneg %p1836_p11 }
 0x1a6   : > { %p1843_p3 = por %p1842_p2, %p1841_p1 }
 0x1a8   : > { %p1844_p4 = pnand %p1843_p3, %p1837_p12 }
 0x1aa   : > { %1847 = shalt.err (!%p1844_p4)
}
 0x1ab   : > { %s1930_s25 = smov 256   ;;  %s2758_s14 = smov 16   ;;  %v1457_v45 = vrot.slane %v1444_v4, %v2233_v3  ;;  %1401 = vrot.lane.b32.xlu1 %v1394_v35, %s2757_s12 }
 0x1ac   : > { %1727 = dma.vmem_to_hbm [thread:$0]  (%p2007_p5), %s2565_s18, 2048, %s2561_s13, %s1479_s26, %s1930_s25, %s1930_s25, %s2758_s14  }
 0x1ad   : > { %s1538_s17 = sshll.u32 %s2220_s11, 4  ;;  %s2759_s9 = smov 48   ;;  %s1539_s17 = int_to_ptr.vmem [resolvable:$true] %s1538_s17 }
 0x1ae   : > { %1466 = vrot.lane.b32.xlu0 %v1457_v45, %s2759_s9  ;;  %s1848_s16 = scalar_lea.vmem %s1539_s17, 32  ;;  %s1931_s19 = smov [#allocation7]  }
 0x1af   : > { %p1849_p7 = scmp.ne.s32.totalorder %s1539_s17, %s1848_s16  ;;  %s1852_s29 = sshll.u32 %s1931_s19, 4  ;;  %s1853_s29 = int_to_ptr.vmem [resolvable:$false] %s1852_s29 }
 0x1b0   : > { %s1854_s13 = scalar_lea.vmem %s1853_s29, 64  ;;  %p1855_p10 = scmp.lt.s32.totalorder %s1539_s17, %s1853_s29 }
 0x1b1   : > { %p1850_p8 = pnand %p1849_p7, %p2007_p5  ;;  %p1856_p11 = scmp.lt.s32.totalorder %s1854_s13, %s1848_s16 }
 0x1b3   : > { %p1851_p9 = pneg %p1850_p8  ;;  %p1857_p12 = por %p1856_p11, %p1855_p10 }
 0x1b5   : > { %p1858_p13 = pnand %p1857_p12, %p1851_p9 }
 0x1b7   : > { %1861 = shalt.err (!%p1858_p13)
}
 0x1b8   : > { %s1862_s11 = scalar_lea.hbm %s2520_s0, 32  ;;  %s1866_s26 = scalar_lea.hbm %s2742_s5, 64 }
 0x1b9   : > { %p1863_p0 = scmp.ne.s32.totalorder %s2520_s0, %s1862_s11  ;;  %p1867_p3 = scmp.lt.u32.totalorder %s2520_s0, %s2742_s5 }
 0x1ba   : > { %p1868_p4 = scmp.lt.u32.totalorder %s1866_s26, %s1862_s11  ;;  %p1870_p8 = scmp.lt.u32.totalorder %s1862_s11, %s2520_s0 }
 0x1bb   : > { %p1864_p1 = pnand %p1863_p0, %p2007_p5 }
 0x1bc   : > { %p1869_p7 = por %p1868_p4, %p1867_p3 }
 0x1bd   : > { %p1865_p2 = pneg %p1864_p1 }
 0x1be   : > { %p1871_p9 = por %p1870_p8, %p1869_p7 }
 0x1c0   : > { %p1872_p10 = pnand %p1871_p9, %p1865_p2 }
 0x1c2   : > { %1875 = shalt.err (!%p1872_p10)
}
 0x1c3   : > { %1729 = dma.vmem_to_hbm [thread:$0]  (%p2007_p5), %s1539_s17, 32, %s2520_s0, %s2531_s10   ;;  %v1461_v6 = vrot.slane %v1445_v41, %v2233_v3  ;;  %v683_v7 = vpop.permute.xlu0 %682  ;;  %v685_v8 = vpop.permute.xlu1 %684 }
 0x1c4   : > { %694 = vst.msk [vmem:[%s2229_s15 + $0x1] sm:$0x1] %vm630_vm7, %v683_v7  ;;  %695 = vst.msk [vmem:[%s2229_s15 + $0x11] sm:$0x1] %vm630_vm7, %v685_v8 }
 0x1c5   : > { %1468 = vrot.lane.b32.xlu1 %v1461_v6, %s2759_s9 }
 0x1c7   : > { %v750_v9 = vpop.permute.xlu0 %749  ;;  %v752_v11 = vpop.permute.xlu1 %751 }
 0x1c8   : > { %761 = vst.msk [vmem:[%s2229_s15 + $0x2] sm:$0x1] %vm630_vm7, %v750_v9  ;;  %762 = vst.msk [vmem:[%s2229_s15 + $0x12] sm:$0x1] %vm630_vm7, %v752_v11 }
 0x1cb   : > { %v817_v3 = vpop.permute.xlu0 %816  ;;  %v819_v12 = vpop.permute.xlu1 %818 }
 0x1cc   : > { %828 = vst.msk [vmem:[%s2229_s15 + $0x3] sm:$0x1] %vm630_vm7, %v817_v3  ;;  %829 = vst.msk [vmem:[%s2229_s15 + $0x13] sm:$0x1] %vm630_vm7, %v819_v12 }
 0x1cf   : > { %v884_v32 = vpop.permute.xlu0 %883  ;;  %v886_v13 = vpop.permute.xlu1 %885 }
 0x1d0   : > { %895 = vst.msk [vmem:[%s2229_s15 + $0x4] sm:$0x1] %vm630_vm7, %v884_v32  ;;  %896 = vst.msk [vmem:[%s2229_s15 + $0x14] sm:$0x1] %vm630_vm7, %v886_v13 }
 0x1d3   : > { %v951_v44 = vpop.permute.xlu0 %950  ;;  %v953_v16 = vpop.permute.xlu1 %952 }
 0x1d4   : > { %962 = vst.msk [vmem:[%s2229_s15 + $0x5] sm:$0x1] %vm630_vm7, %v951_v44  ;;  %963 = vst.msk [vmem:[%s2229_s15 + $0x15] sm:$0x1] %vm630_vm7, %v953_v16 }
 0x1d7   : > { %v1018_v17 = vpop.permute.xlu0 %1017  ;;  %v1020_v18 = vpop.permute.xlu1 %1019 }
 0x1d8   : > { %1029 = vst.msk [vmem:[%s2229_s15 + $0x6] sm:$0x1] %vm630_vm7, %v1018_v17  ;;  %1030 = vst.msk [vmem:[%s2229_s15 + $0x16] sm:$0x1] %vm630_vm7, %v1020_v18 }
 0x1db   : > { %v1085_v20 = vpop.permute.xlu0 %1084  ;;  %v1087_v21 = vpop.permute.xlu1 %1086 }
 0x1dc   : > { %1096 = vst.msk [vmem:[%s2229_s15 + $0x7] sm:$0x1] %vm630_vm7, %v1085_v20  ;;  %1097 = vst.msk [vmem:[%s2229_s15 + $0x17] sm:$0x1] %vm630_vm7, %v1087_v21 }
 0x1df   : > { %v1195_v22 = vpop.permute.xlu0 %1194  ;;  %v1197_v40 = vpop.permute.xlu1 %1196 }
 0x1e0   : > { %1206 = vst.msk [vmem:[%s2229_s15 + $0x9] sm:$0x1] %vm630_vm7, %v1195_v22  ;;  %1207 = vst.msk [vmem:[%s2229_s15 + $0x19] sm:$0x1] %vm630_vm7, %v1197_v40 }
 0x1e3   : > { %v1262_v27 = vpop.permute.xlu0 %1261  ;;  %v1264_v29 = vpop.permute.xlu1 %1263 }
 0x1e4   : > { %1273 = vst.msk [vmem:[%s2229_s15 + $0xa] sm:$0x1] %vm630_vm7, %v1262_v27  ;;  %1274 = vst.msk [vmem:[%s2229_s15 + $0x1a] sm:$0x1] %vm630_vm7, %v1264_v29 }
 0x1e7   : > { %v1329_v43 = vpop.permute.xlu0 %1328  ;;  %v1331_v46 = vpop.permute.xlu1 %1330 }
 0x1e8   : > { %1340 = vst.msk [vmem:[%s2229_s15 + $0xb] sm:$0x1] %vm630_vm7, %v1329_v43  ;;  %1341 = vst.msk [vmem:[%s2229_s15 + $0x1b] sm:$0x1] %vm630_vm7, %v1331_v46 }
 0x1eb   : > { %v1396_v47 = vpop.permute.xlu0 %1395  ;;  %v1398_v28 = vpop.permute.xlu1 %1397 }
 0x1ec   : > { %1407 = vst.msk [vmem:[%s2229_s15 + $0xc] sm:$0x1] %vm630_vm7, %v1396_v47  ;;  %1408 = vst.msk [vmem:[%s2229_s15 + $0x1c] sm:$0x1] %vm630_vm7, %v1398_v28 }
 0x1ef   : > { %v1463_v10 = vpop.permute.xlu0 %1462  ;;  %v1465_v49 = vpop.permute.xlu1 %1464 }
 0x1f0   : > { %1474 = vst.msk [vmem:[%s2229_s15 + $0xd] sm:$0x1] %vm630_vm7, %v1463_v10  ;;  %1475 = vst.msk [vmem:[%s2229_s15 + $0x1d] sm:$0x1] %vm630_vm7, %v1465_v49 }
 0x1f3   : > { %v687_v48 = vpop.permute.xlu0 %686  ;;  %v689_v19 = vpop.permute.xlu1 %688 }
 0x1f4   : > { %696 = vst.msk [vmem:[%s2229_s15 + $0x21] sm:$0x1] %vm630_vm7, %v687_v48  ;;  %697 = vst.msk [vmem:[%s2229_s15 + $0x31] sm:$0x1] %vm630_vm7, %v689_v19 }
 0x1f7   : > { %v754_v51 = vpop.permute.xlu0 %753  ;;  %v756_v24 = vpop.permute.xlu1 %755 }
 0x1f8   : > { %763 = vst.msk [vmem:[%s2229_s15 + $0x22] sm:$0x1] %vm630_vm7, %v754_v51  ;;  %764 = vst.msk [vmem:[%s2229_s15 + $0x32] sm:$0x1] %vm630_vm7, %v756_v24 }
 0x1fb   : > { %v821_v55 = vpop.permute.xlu0 %820  ;;  %v823_v25 = vpop.permute.xlu1 %822 }
 0x1fc   : > { %830 = vst.msk [vmem:[%s2229_s15 + $0x23] sm:$0x1] %vm630_vm7, %v821_v55  ;;  %831 = vst.msk [vmem:[%s2229_s15 + $0x33] sm:$0x1] %vm630_vm7, %v823_v25 }
 0x1ff   : > { %v888_v39 = vpop.permute.xlu0 %887  ;;  %v890_v30 = vpop.permute.xlu1 %889 }
 0x200   : > { %897 = vst.msk [vmem:[%s2229_s15 + $0x24] sm:$0x1] %vm630_vm7, %v888_v39  ;;  %898 = vst.msk [vmem:[%s2229_s15 + $0x34] sm:$0x1] %vm630_vm7, %v890_v30 }
 0x203   : > { %v955_v34 = vpop.permute.xlu0 %954  ;;  %v957_v63 = vpop.permute.xlu1 %956 }
 0x204   : > { %964 = vst.msk [vmem:[%s2229_s15 + $0x25] sm:$0x1] %vm630_vm7, %v955_v34  ;;  %965 = vst.msk [vmem:[%s2229_s15 + $0x35] sm:$0x1] %vm630_vm7, %v957_v63 }
 0x207   : > { %v1022_v54 = vpop.permute.xlu0 %1021  ;;  %v1024_v56 = vpop.permute.xlu1 %1023 }
 0x208   : > { %1031 = vst.msk [vmem:[%s2229_s15 + $0x26] sm:$0x1] %vm630_vm7, %v1022_v54  ;;  %1032 = vst.msk [vmem:[%s2229_s15 + $0x36] sm:$0x1] %vm630_vm7, %v1024_v56 }
 0x20b   : > { %v1089_v5 = vpop.permute.xlu0 %1088  ;;  %v1091_v38 = vpop.permute.xlu1 %1090 }
 0x20c   : > { %1098 = vst.msk [vmem:[%s2229_s15 + $0x27] sm:$0x1] %vm630_vm7, %v1089_v5  ;;  %1099 = vst.msk [vmem:[%s2229_s15 + $0x37] sm:$0x1] %vm630_vm7, %v1091_v38 }
 0x20f   : > { %v1199_v50 = vpop.permute.xlu0 %1198  ;;  %v1201_v33 = vpop.permute.xlu1 %1200 }
 0x210   : > { %1208 = vst.msk [vmem:[%s2229_s15 + $0x29] sm:$0x1] %vm630_vm7, %v1199_v50  ;;  %1209 = vst.msk [vmem:[%s2229_s15 + $0x39] sm:$0x1] %vm630_vm7, %v1201_v33 }
 0x213   : > { %v1266_v14 = vpop.permute.xlu0 %1265  ;;  %v1268_v15 = vpop.permute.xlu1 %1267 }
 0x214   : > { %1275 = vst.msk [vmem:[%s2229_s15 + $0x2a] sm:$0x1] %vm630_vm7, %v1266_v14  ;;  %1276 = vst.msk [vmem:[%s2229_s15 + $0x3a] sm:$0x1] %vm630_vm7, %v1268_v15 }
 0x217   : > { %v1333_v57 = vpop.permute.xlu0 %1332  ;;  %v1335_v58 = vpop.permute.xlu1 %1334 }
 0x218   : > { %1342 = vst.msk [vmem:[%s2229_s15 + $0x2b] sm:$0x1] %vm630_vm7, %v1333_v57  ;;  %1343 = vst.msk [vmem:[%s2229_s15 + $0x3b] sm:$0x1] %vm630_vm7, %v1335_v58 }
 0x21b   : > { %v1400_v23 = vpop.permute.xlu0 %1399 }
 0x21c   : > { %1409 = vst.msk [vmem:[%s2229_s15 + $0x2c] sm:$0x1] %vm630_vm7, %v1400_v23 }
 0x21d   : > { %v1402_v26 = vpop.permute.xlu1 %1401 }
 0x21e   : > { %1410 = vst.msk [vmem:[%s2229_s15 + $0x3c] sm:$0x1] %vm630_vm7, %v1402_v26 }
 0x220   : > { %v1467_v37 = vpop.permute.xlu0 %1466 }
 0x221   : > { %1476 = vst.msk [vmem:[%s2229_s15 + $0x2d] sm:$0x1] %vm630_vm7, %v1467_v37 }
 0x237   : > { %v1469_v52 = vpop.permute.xlu1 %1468 }
 0x238   : > { %1477 = vst.msk [vmem:[%s2229_s15 + $0x3d] sm:$0x1] %vm630_vm7, %v1469_v52 }
 0x239 PF: > { %p1743_p5 = scmp.ge.s32.totalorder %s1914_s24, 2  ;;  %s1553_s0 = sand.u32 1, %s1902_s21  }
 0x23a   : > { %s1554_s7 = scalar_lea.sflag [#allocation4], %s1553_s0 }
 0x23b   : > { %p1734_p11 = pnand %p1743_p5, %p2011_p6 }
 0x23d   : > { %1893 = dma.done.wait (!%p1734_p11), %s1554_s7, 2048  }
 0x23e   : > { %1895 = vsyncadd (!%p1734_p11), %s1554_s7, 4294965248  ;;  %s2760_s10 = sadd.s32 4294967294, %s1914_s24  }
 0x23f   : > { %s1562_s25 = sand.u32 1, %s2760_s10  }
 0x240   : > { %s1563_s14 = scalar_lea.sflag [#allocation6], %s1562_s25 }
 0x241   : > { %1897 = dma.done.wait (!%p1734_p11), %s1563_s14, 64  }
 0x242   : > { %1899 = vsyncadd (!%p1734_p11), %s1563_s14, 4294967232  ;;  %p20_p12 = scmp.ge.s32.totalorder %s1992_s27, 4   ;;  %s2761_s21 = smov %s1906_s22 }
 0x243   : > { %s2762_s22 = smov %s1910_s23  ;;  %s2763_s23 = smov %s2005_s30 }
 0x244   : > { %s2764_s24 = smov %s1992_s27  ;;  %22 = sbr.rel (!%p20_p12) target bundleno = 7 (0x7), region = 111 }
 0x24b   :  { %1585 = vsyncpa [#allocation4], 1 }
 0x24c   :  { %1587 = vsyncpa [#allocation4 + $0x1], 1 }
 0x24d   :  { %1588 = vsyncpa [#allocation6], 1 }
 0x24e   :  { %1590 = vsyncpa [#allocation6 + $0x1], 1 }

</bundles_post_ra>
